<compile_context>
chip_gen: v7x
topology: tpu7x:2x2x1
jax: 0.10.0
libtpu: 0.0.40
codegen_flags: <defaults>
</compile_context>

<pallas_src>
import functools

import jax
import jax.numpy as jnp
from jax.experimental import pallas as pl
from jax.experimental.pallas import tpu as pltpu


def stepwise_lstm_kernel(
    x_ref,                 # (T, Bp, I)   VMEM
    w0_ref, b0_ref,        # (I+H, 4H), (1, 4H)   fused layer-0 weight / bias
    w1_ref, b1_ref,        # (2H, 4H),  (1, 4H)   fused layer-1 weight / bias
    wfc_ref, bfc_ref,      # (H, I), (1, I)
    out_ref,               # (P, Bp, I)   VMEM
    *, hidden_size, seq_len, predict_size, batch,
):
    H = hidden_size
    Bp = batch
    I = wfc_ref.shape[1]

    # ---- loop-invariant loads / broadcasts, hoisted once ----
    w0 = w0_ref[...]
    w1 = w1_ref[...]
    wfc = wfc_ref[...]
    b0 = jnp.broadcast_to(b0_ref[...], (Bp, 4 * H))
    b1 = jnp.broadcast_to(b1_ref[...], (Bp, 4 * H))
    bfc = jnp.broadcast_to(bfc_ref[...], (Bp, I))

    def cell(x_t, h, c, w, b):
        """One LSTM cell step; gate order matches torch.nn.LSTM: i, f, g, o."""
        # Single fused MXU op: [x_t, h] @ [W_ih; W_hh] + (b_ih + b_hh).
        xh = jnp.concatenate([x_t, h], axis=-1)
        gates = jnp.dot(xh, w, preferred_element_type=jnp.float32) + b
        # Activate the full (Bp, 4H) register once per nonlinearity
        # (2 EUP pushes per cell), then slice the activated results.
        sg = jax.nn.sigmoid(gates)
        th = jnp.tanh(gates)
        i_g = sg[:, 0:H]
        f_g = sg[:, H:2 * H]
        g_g = th[:, 2 * H:3 * H]
        o_g = sg[:, 3 * H:4 * H]
        c_new = f_g * c + i_g * g_g
        h_new = o_g * jnp.tanh(c_new)
        return h_new, c_new

    zeros = jnp.zeros((Bp, H), jnp.float32)       # h_0 / c_0 = 0 (as in torch)
    h0, c0, h1, c1 = zeros, zeros, zeros, zeros

    # ---- encoder: 2-layer LSTM over the input window (fully unrolled) ----
    for t in range(seq_len):
        x_t = x_ref[t]                            # (Bp, I)
        h0, c0 = cell(x_t, h0, c0, w0, b0)
        h1, c1 = cell(h0, h1, c1, w1, b1)

    # decoder_input = x[:, -1, :]
    dec = x_ref[seq_len - 1]

    # ---- decoder: autoregressive roll-out (fully unrolled) ----
    for t in range(predict_size):
        h0, c0 = cell(dec, h0, c0, w0, b0)
        h1, c1 = cell(h0, h1, c1, w1, b1)
        pred = jnp.dot(h1, wfc, preferred_element_type=jnp.float32) + bfc
        out_ref[t] = pred                         # (Bp, I) store
        dec = pred                                # feed back (stays in vregs)


def stepwise_lstm_forward(x, params, *, hidden_size, predict_size):
    """x: (B, T, I) float32 -> (B, P, I) float32 (batch-first, like PyTorch)."""
    B, T, I = x.shape
    H = hidden_size
    Bp = max(8, ((B + 7) // 8) * 8)               # pad batch to a sublane tile

    # time-major + batch padding (padded rows are independent, sliced off)
    x_tm = jnp.transpose(x, (1, 0, 2)).astype(jnp.float32)        # (T, B, I)
    x_tm = jnp.pad(x_tm, ((0, 0), (0, Bp - B), (0, 0)))           # (T, Bp, I)

    # Fuse per-layer input/hidden weights into one (in+H, 4H) operand and fold
    # the paired biases -- identical math to torch.nn.LSTM.
    w0 = jnp.concatenate([params["w_ih_l0"].T, params["w_hh_l0"].T], axis=0)
    b0 = (params["b_ih_l0"] + params["b_hh_l0"]).reshape(1, 4 * H)
    w1 = jnp.concatenate([params["w_ih_l1"].T, params["w_hh_l1"].T], axis=0)
    b1 = (params["b_ih_l1"] + params["b_hh_l1"]).reshape(1, 4 * H)
    wfc = params["w_fc"].T                                        # (H, I)
    bfc = params["b_fc"].reshape(1, I)

    kernel = functools.partial(
        stepwise_lstm_kernel,
        hidden_size=H, seq_len=T, predict_size=predict_size, batch=Bp,
    )
    vmem = pl.BlockSpec(memory_space=pltpu.MemorySpace.VMEM)

    out_tm = pl.pallas_call(
        kernel,
        out_shape=jax.ShapeDtypeStruct((predict_size, Bp, I), jnp.float32),
        in_specs=[vmem] * 7,
        out_specs=vmem,
    )(x_tm, w0, b0, w1, b1, wfc, bfc)

    # back to batch-first, drop the batch padding
    return jnp.transpose(out_tm[:, :B, :], (1, 0, 2))             # (B, P, I)


# --------------------- deterministic parameter init ----------------------
def init_params(key, input_size, hidden_size):
    H = hidden_size
    k = 1.0 / jnp.sqrt(jnp.float32(H))
    keys = jax.random.split(key, 10)

    def u(k_, shape):
        return jax.random.uniform(k_, shape, jnp.float32, minval=-k, maxval=k)

    return {
        "w_ih_l0": u(keys[0], (4 * H, input_size)),
        "w_hh_l0": u(keys[1], (4 * H, H)),
        "b_ih_l0": u(keys[2], (4 * H,)),
        "b_hh_l0": u(keys[3], (4 * H,)),
        "w_ih_l1": u(keys[4], (4 * H, H)),
        "w_hh_l1": u(keys[5], (4 * H, H)),
        "b_ih_l1": u(keys[6], (4 * H,)),
        "b_hh_l1": u(keys[7], (4 * H,)),
        "w_fc":    u(keys[8], (input_size, H)),
        "b_fc":    u(keys[9], (input_size,)),
    }


# --------------------------- pure-JAX reference ---------------------------
def _cell_ref(x_t, h, c, wih, whh, bih, bhh, H):
    gates = x_t @ wih.T + bih + h @ whh.T + bhh
    i = jax.nn.sigmoid(gates[:, 0:H])
    f = jax.nn.sigmoid(gates[:, H:2 * H])
    g = jnp.tanh(gates[:, 2 * H:3 * H])
    o = jax.nn.sigmoid(gates[:, 3 * H:4 * H])
    c = f * c + i * g
    h = o * jnp.tanh(c)
    return h, c


def reference_forward(x, p, *, hidden_size, predict_size):
    B, T, I = x.shape
    H = hidden_size
    h0 = c0 = h1 = c1 = jnp.zeros((B, H), jnp.float32)
    for t in range(T):
        h0, c0 = _cell_ref(x[:, t, :], h0, c0, p["w_ih_l0"], p["w_hh_l0"],
                           p["b_ih_l0"], p["b_hh_l0"], H)
        h1, c1 = _cell_ref(h0, h1, c1, p["w_ih_l1"], p["w_hh_l1"],
                           p["b_ih_l1"], p["b_hh_l1"], H)
    dec = x[:, -1, :]
    outs = []
    for _ in range(predict_size):
        h0, c0 = _cell_ref(dec, h0, c0, p["w_ih_l0"], p["w_hh_l0"],
                           p["b_ih_l0"], p["b_hh_l0"], H)
        h1, c1 = _cell_ref(h0, h1, c1, p["w_ih_l1"], p["w_hh_l1"],
                           p["b_ih_l1"], p["b_hh_l1"], H)
        pred = h1 @ p["w_fc"].T + p["b_fc"]
        outs.append(pred)
        dec = pred
    return jnp.stack(outs, axis=1)


if __name__ == "__main__":
    INPUT_SIZE = 6
    HIDDEN_SIZE = 32
    PREDICT_SIZE = 5
    BATCH = 2
    WINDOW = 8

    key = jax.random.PRNGKey(0)
    k_x, k_p = jax.random.split(key)
    x = jax.random.normal(k_x, (BATCH, WINDOW, INPUT_SIZE), jnp.float32)
    params = init_params(k_p, INPUT_SIZE, HIDDEN_SIZE)

    out = stepwise_lstm_forward(
        x, params, hidden_size=HIDDEN_SIZE, predict_size=PREDICT_SIZE
    )
    out = jax.block_until_ready(out)
    assert out.shape == (BATCH, PREDICT_SIZE, INPUT_SIZE), out.shape

    ref = reference_forward(
        x, params, hidden_size=HIDDEN_SIZE, predict_size=PREDICT_SIZE
    )
    ref = jax.block_until_ready(ref)
    assert jnp.allclose(out, ref, atol=1e-4, rtol=1e-4), (
        float(jnp.max(jnp.abs(out - ref)))
    )

    print("KERNEL_OK")
</pallas_src>

<mosaic_0001>
module attributes {stable_mosaic.version = 11 : i64} {
  func.func @stepwise_lstm_kernel(%arg0: memref<8x8x6xf32, #tpu.memory_space<vmem>>, %arg1: memref<38x128xf32, #tpu.memory_space<vmem>>, %arg2: memref<1x128xf32, #tpu.memory_space<vmem>>, %arg3: memref<64x128xf32, #tpu.memory_space<vmem>>, %arg4: memref<1x128xf32, #tpu.memory_space<vmem>>, %arg5: memref<32x6xf32, #tpu.memory_space<vmem>>, %arg6: memref<1x6xf32, #tpu.memory_space<vmem>>, %arg7: memref<5x8x6xf32, #tpu.memory_space<vmem>>) attributes {dimension_semantics = [], scalar_prefetch = 0 : i64, scratch_operands = 0 : i64, tpu.core_type = #tpu.core_type<tc>} {
    %c0 = arith.constant 0 : index
    %c0_0 = arith.constant 0 : index
    %0 = vector.load %arg1[%c0, %c0_0] : memref<38x128xf32, #tpu.memory_space<vmem>>, vector<38x128xf32>
    %c0_1 = arith.constant 0 : index
    %c0_2 = arith.constant 0 : index
    %1 = vector.load %arg3[%c0_1, %c0_2] : memref<64x128xf32, #tpu.memory_space<vmem>>, vector<64x128xf32>
    %c0_3 = arith.constant 0 : index
    %c0_4 = arith.constant 0 : index
    %2 = vector.load %arg5[%c0_3, %c0_4] : memref<32x6xf32, #tpu.memory_space<vmem>>, vector<32x6xf32>
    %c0_5 = arith.constant 0 : index
    %c0_6 = arith.constant 0 : index
    %3 = vector.load %arg2[%c0_5, %c0_6] : memref<1x128xf32, #tpu.memory_space<vmem>>, vector<1x128xf32>
    %4 = vector.shape_cast %3 : vector<1x128xf32> to vector<1x128xf32>
    %5 = vector.broadcast %4 : vector<1x128xf32> to vector<8x128xf32>
    %c0_7 = arith.constant 0 : index
    %c0_8 = arith.constant 0 : index
    %6 = vector.load %arg4[%c0_7, %c0_8] : memref<1x128xf32, #tpu.memory_space<vmem>>, vector<1x128xf32>
    %7 = vector.shape_cast %6 : vector<1x128xf32> to vector<1x128xf32>
    %8 = vector.broadcast %7 : vector<1x128xf32> to vector<8x128xf32>
    %c0_9 = arith.constant 0 : index
    %c0_10 = arith.constant 0 : index
    %9 = vector.load %arg6[%c0_9, %c0_10] : memref<1x6xf32, #tpu.memory_space<vmem>>, vector<1x6xf32>
    %10 = vector.shape_cast %9 : vector<1x6xf32> to vector<1x6xf32>
    %11 = vector.broadcast %10 : vector<1x6xf32> to vector<8x6xf32>
    %cst = arith.constant 0.000000e+00 : f32
    %12 = vector.broadcast %cst : f32 to vector<8x32xf32>
    %c0_11 = arith.constant 0 : index
    %c0_12 = arith.constant 0 : index
    %c0_13 = arith.constant 0 : index
    %13 = vector.load %arg0[%c0_11, %c0_12, %c0_13] : memref<8x8x6xf32, #tpu.memory_space<vmem>>, vector<1x8x6xf32>
    %14 = vector.shape_cast %13 : vector<1x8x6xf32> to vector<8x6xf32>
    %15 = tpu.concatenate %14, %12 in 1 : vector<8x6xf32>, vector<8x32xf32> -> vector<8x38xf32>
    %cst_14 = arith.constant dense<0.000000e+00> : vector<8x128xf32>
    %16 = tpu.matmul %15, %0, %cst_14 {dimension_numbers = #tpu.dot_dimension_numbers<[1], [0], [0], [1], [0, 0, 1, 1], [], []>} : vector<8x38xf32>, vector<38x128xf32>, vector<8x128xf32> -> vector<8x128xf32>
    %17 = arith.addf %16, %5 : vector<8x128xf32>
    %18 = arith.negf %17 : vector<8x128xf32>
    %19 = math.exp %18 : vector<8x128xf32>
    %cst_15 = arith.constant 1.000000e+00 : f32
    %20 = vector.broadcast %cst_15 : f32 to vector<8x128xf32>
    %21 = arith.addf %20, %19 : vector<8x128xf32>
    %22 = arith.divf %20, %21 : vector<8x128xf32>
    %23 = math.tanh %17 : vector<8x128xf32>
    %24 = vector.extract_strided_slice %22 {offsets = [0, 0], sizes = [8, 32], strides = [1, 1]} : vector<8x128xf32> to vector<8x32xf32>
    %25 = vector.extract_strided_slice %22 {offsets = [0, 32], sizes = [8, 32], strides = [1, 1]} : vector<8x128xf32> to vector<8x32xf32>
    %26 = vector.extract_strided_slice %23 {offsets = [0, 64], sizes = [8, 32], strides = [1, 1]} : vector<8x128xf32> to vector<8x32xf32>
    %27 = vector.extract_strided_slice %22 {offsets = [0, 96], sizes = [8, 32], strides = [1, 1]} : vector<8x128xf32> to vector<8x32xf32>
    %28 = arith.mulf %25, %12 : vector<8x32xf32>
    %29 = arith.mulf %24, %26 : vector<8x32xf32>
    %30 = arith.addf %28, %29 : vector<8x32xf32>
    %31 = math.tanh %30 : vector<8x32xf32>
    %32 = arith.mulf %27, %31 : vector<8x32xf32>
    %33 = tpu.concatenate %32, %12 in 1 : vector<8x32xf32>, vector<8x32xf32> -> vector<8x64xf32>
    %cst_16 = arith.constant dense<0.000000e+00> : vector<8x128xf32>
    %34 = tpu.matmul %33, %1, %cst_16 {dimension_numbers = #tpu.dot_dimension_numbers<[1], [0], [0], [1], [0, 0, 1, 1], [], []>} : vector<8x64xf32>, vector<64x128xf32>, vector<8x128xf32> -> vector<8x128xf32>
    %35 = arith.addf %34, %8 : vector<8x128xf32>
    %36 = arith.negf %35 : vector<8x128xf32>
    %37 = math.exp %36 : vector<8x128xf32>
    %cst_17 = arith.constant 1.000000e+00 : f32
    %38 = vector.broadcast %cst_17 : f32 to vector<8x128xf32>
    %39 = arith.addf %38, %37 : vector<8x128xf32>
    %40 = arith.divf %38, %39 : vector<8x128xf32>
    %41 = math.tanh %35 : vector<8x128xf32>
    %42 = vector.extract_strided_slice %40 {offsets = [0, 0], sizes = [8, 32], strides = [1, 1]} : vector<8x128xf32> to vector<8x32xf32>
    %43 = vector.extract_strided_slice %40 {offsets = [0, 32], sizes = [8, 32], strides = [1, 1]} : vector<8x128xf32> to vector<8x32xf32>
    %44 = vector.extract_strided_slice %41 {offsets = [0, 64], sizes = [8, 32], strides = [1, 1]} : vector<8x128xf32> to vector<8x32xf32>
    %45 = vector.extract_strided_slice %40 {offsets = [0, 96], sizes = [8, 32], strides = [1, 1]} : vector<8x128xf32> to vector<8x32xf32>
    %46 = arith.mulf %43, %12 : vector<8x32xf32>
    %47 = arith.mulf %42, %44 : vector<8x32xf32>
    %48 = arith.addf %46, %47 : vector<8x32xf32>
    %49 = math.tanh %48 : vector<8x32xf32>
    %50 = arith.mulf %45, %49 : vector<8x32xf32>
    %c1 = arith.constant 1 : index
    %c0_18 = arith.constant 0 : index
    %c0_19 = arith.constant 0 : index
    %51 = vector.load %arg0[%c1, %c0_18, %c0_19] : memref<8x8x6xf32, #tpu.memory_space<vmem>>, vector<1x8x6xf32>
    %52 = vector.shape_cast %51 : vector<1x8x6xf32> to vector<8x6xf32>
    %53 = tpu.concatenate %52, %32 in 1 : vector<8x6xf32>, vector<8x32xf32> -> vector<8x38xf32>
    %cst_20 = arith.constant dense<0.000000e+00> : vector<8x128xf32>
    %54 = tpu.matmul %53, %0, %cst_20 {dimension_numbers = #tpu.dot_dimension_numbers<[1], [0], [0], [1], [0, 0, 1, 1], [], []>} : vector<8x38xf32>, vector<38x128xf32>, vector<8x128xf32> -> vector<8x128xf32>
    %55 = arith.addf %54, %5 : vector<8x128xf32>
    %56 = arith.negf %55 : vector<8x128xf32>
    %57 = math.exp %56 : vector<8x128xf32>
    %cst_21 = arith.constant 1.000000e+00 : f32
    %58 = vector.broadcast %cst_21 : f32 to vector<8x128xf32>
    %59 = arith.addf %58, %57 : vector<8x128xf32>
    %60 = arith.divf %58, %59 : vector<8x128xf32>
    %61 = math.tanh %55 : vector<8x128xf32>
    %62 = vector.extract_strided_slice %60 {offsets = [0, 0], sizes = [8, 32], strides = [1, 1]} : vector<8x128xf32> to vector<8x32xf32>
    %63 = vector.extract_strided_slice %60 {offsets = [0, 32], sizes = [8, 32], strides = [1, 1]} : vector<8x128xf32> to vector<8x32xf32>
    %64 = vector.extract_strided_slice %61 {offsets = [0, 64], sizes = [8, 32], strides = [1, 1]} : vector<8x128xf32> to vector<8x32xf32>
    %65 = vector.extract_strided_slice %60 {offsets = [0, 96], sizes = [8, 32], strides = [1, 1]} : vector<8x128xf32> to vector<8x32xf32>
    %66 = arith.mulf %63, %30 : vector<8x32xf32>
    %67 = arith.mulf %62, %64 : vector<8x32xf32>
    %68 = arith.addf %66, %67 : vector<8x32xf32>
    %69 = math.tanh %68 : vector<8x32xf32>
    %70 = arith.mulf %65, %69 : vector<8x32xf32>
    %71 = tpu.concatenate %70, %50 in 1 : vector<8x32xf32>, vector<8x32xf32> -> vector<8x64xf32>
    %cst_22 = arith.constant dense<0.000000e+00> : vector<8x128xf32>
    %72 = tpu.matmul %71, %1, %cst_22 {dimension_numbers = #tpu.dot_dimension_numbers<[1], [0], [0], [1], [0, 0, 1, 1], [], []>} : vector<8x64xf32>, vector<64x128xf32>, vector<8x128xf32> -> vector<8x128xf32>
    %73 = arith.addf %72, %8 : vector<8x128xf32>
    %74 = arith.negf %73 : vector<8x128xf32>
    %75 = math.exp %74 : vector<8x128xf32>
    %cst_23 = arith.constant 1.000000e+00 : f32
    %76 = vector.broadcast %cst_23 : f32 to vector<8x128xf32>
    %77 = arith.addf %76, %75 : vector<8x128xf32>
    %78 = arith.divf %76, %77 : vector<8x128xf32>
    %79 = math.tanh %73 : vector<8x128xf32>
    %80 = vector.extract_strided_slice %78 {offsets = [0, 0], sizes = [8, 32], strides = [1, 1]} : vector<8x128xf32> to vector<8x32xf32>
    %81 = vector.extract_strided_slice %78 {offsets = [0, 32], sizes = [8, 32], strides = [1, 1]} : vector<8x128xf32> to vector<8x32xf32>
    %82 = vector.extract_strided_slice %79 {offsets = [0, 64], sizes = [8, 32], strides = [1, 1]} : vector<8x128xf32> to vector<8x32xf32>
    %83 = vector.extract_strided_slice %78 {offsets = [0, 96], sizes = [8, 32], strides = [1, 1]} : vector<8x128xf32> to vector<8x32xf32>
    %84 = arith.mulf %81, %48 : vector<8x32xf32>
    %85 = arith.mulf %80, %82 : vector<8x32xf32>
    %86 = arith.addf %84, %85 : vector<8x32xf32>
    %87 = math.tanh %86 : vector<8x32xf32>
    %88 = arith.mulf %83, %87 : vector<8x32xf32>
    %c2 = arith.constant 2 : index
    %c0_24 = arith.constant 0 : index
    %c0_25 = arith.constant 0 : index
    %89 = vector.load %arg0[%c2, %c0_24, %c0_25] : memref<8x8x6xf32, #tpu.memory_space<vmem>>, vector<1x8x6xf32>
    %90 = vector.shape_cast %89 : vector<1x8x6xf32> to vector<8x6xf32>
    %91 = tpu.concatenate %90, %70 in 1 : vector<8x6xf32>, vector<8x32xf32> -> vector<8x38xf32>
    %cst_26 = arith.constant dense<0.000000e+00> : vector<8x128xf32>
    %92 = tpu.matmul %91, %0, %cst_26 {dimension_numbers = #tpu.dot_dimension_numbers<[1], [0], [0], [1], [0, 0, 1, 1], [], []>} : vector<8x38xf32>, vector<38x128xf32>, vector<8x128xf32> -> vector<8x128xf32>
    %93 = arith.addf %92, %5 : vector<8x128xf32>
    %94 = arith.negf %93 : vector<8x128xf32>
    %95 = math.exp %94 : vector<8x128xf32>
    %cst_27 = arith.constant 1.000000e+00 : f32
    %96 = vector.broadcast %cst_27 : f32 to vector<8x128xf32>
    %97 = arith.addf %96, %95 : vector<8x128xf32>
    %98 = arith.divf %96, %97 : vector<8x128xf32>
    %99 = math.tanh %93 : vector<8x128xf32>
    %100 = vector.extract_strided_slice %98 {offsets = [0, 0], sizes = [8, 32], strides = [1, 1]} : vector<8x128xf32> to vector<8x32xf32>
    %101 = vector.extract_strided_slice %98 {offsets = [0, 32], sizes = [8, 32], strides = [1, 1]} : vector<8x128xf32> to vector<8x32xf32>
    %102 = vector.extract_strided_slice %99 {offsets = [0, 64], sizes = [8, 32], strides = [1, 1]} : vector<8x128xf32> to vector<8x32xf32>
    %103 = vector.extract_strided_slice %98 {offsets = [0, 96], sizes = [8, 32], strides = [1, 1]} : vector<8x128xf32> to vector<8x32xf32>
    %104 = arith.mulf %101, %68 : vector<8x32xf32>
    %105 = arith.mulf %100, %102 : vector<8x32xf32>
    %106 = arith.addf %104, %105 : vector<8x32xf32>
    %107 = math.tanh %106 : vector<8x32xf32>
    %108 = arith.mulf %103, %107 : vector<8x32xf32>
    %109 = tpu.concatenate %108, %88 in 1 : vector<8x32xf32>, vector<8x32xf32> -> vector<8x64xf32>
    %cst_28 = arith.constant dense<0.000000e+00> : vector<8x128xf32>
    %110 = tpu.matmul %109, %1, %cst_28 {dimension_numbers = #tpu.dot_dimension_numbers<[1], [0], [0], [1], [0, 0, 1, 1], [], []>} : vector<8x64xf32>, vector<64x128xf32>, vector<8x128xf32> -> vector<8x128xf32>
    %111 = arith.addf %110, %8 : vector<8x128xf32>
    %112 = arith.negf %111 : vector<8x128xf32>
    %113 = math.exp %112 : vector<8x128xf32>
    %cst_29 = arith.constant 1.000000e+00 : f32
    %114 = vector.broadcast %cst_29 : f32 to vector<8x128xf32>
    %115 = arith.addf %114, %113 : vector<8x128xf32>
    %116 = arith.divf %114, %115 : vector<8x128xf32>
    %117 = math.tanh %111 : vector<8x128xf32>
    %118 = vector.extract_strided_slice %116 {offsets = [0, 0], sizes = [8, 32], strides = [1, 1]} : vector<8x128xf32> to vector<8x32xf32>
    %119 = vector.extract_strided_slice %116 {offsets = [0, 32], sizes = [8, 32], strides = [1, 1]} : vector<8x128xf32> to vector<8x32xf32>
    %120 = vector.extract_strided_slice %117 {offsets = [0, 64], sizes = [8, 32], strides = [1, 1]} : vector<8x128xf32> to vector<8x32xf32>
    %121 = vector.extract_strided_slice %116 {offsets = [0, 96], sizes = [8, 32], strides = [1, 1]} : vector<8x128xf32> to vector<8x32xf32>
    %122 = arith.mulf %119, %86 : vector<8x32xf32>
    %123 = arith.mulf %118, %120 : vector<8x32xf32>
    %124 = arith.addf %122, %123 : vector<8x32xf32>
    %125 = math.tanh %124 : vector<8x32xf32>
    %126 = arith.mulf %121, %125 : vector<8x32xf32>
    %c3 = arith.constant 3 : index
    %c0_30 = arith.constant 0 : index
    %c0_31 = arith.constant 0 : index
    %127 = vector.load %arg0[%c3, %c0_30, %c0_31] : memref<8x8x6xf32, #tpu.memory_space<vmem>>, vector<1x8x6xf32>
    %128 = vector.shape_cast %127 : vector<1x8x6xf32> to vector<8x6xf32>
    %129 = tpu.concatenate %128, %108 in 1 : vector<8x6xf32>, vector<8x32xf32> -> vector<8x38xf32>
    %cst_32 = arith.constant dense<0.000000e+00> : vector<8x128xf32>
    %130 = tpu.matmul %129, %0, %cst_32 {dimension_numbers = #tpu.dot_dimension_numbers<[1], [0], [0], [1], [0, 0, 1, 1], [], []>} : vector<8x38xf32>, vector<38x128xf32>, vector<8x128xf32> -> vector<8x128xf32>
    %131 = arith.addf %130, %5 : vector<8x128xf32>
    %132 = arith.negf %131 : vector<8x128xf32>
    %133 = math.exp %132 : vector<8x128xf32>
    %cst_33 = arith.constant 1.000000e+00 : f32
    %134 = vector.broadcast %cst_33 : f32 to vector<8x128xf32>
    %135 = arith.addf %134, %133 : vector<8x128xf32>
    %136 = arith.divf %134, %135 : vector<8x128xf32>
    %137 = math.tanh %131 : vector<8x128xf32>
    %138 = vector.extract_strided_slice %136 {offsets = [0, 0], sizes = [8, 32], strides = [1, 1]} : vector<8x128xf32> to vector<8x32xf32>
    %139 = vector.extract_strided_slice %136 {offsets = [0, 32], sizes = [8, 32], strides = [1, 1]} : vector<8x128xf32> to vector<8x32xf32>
    %140 = vector.extract_strided_slice %137 {offsets = [0, 64], sizes = [8, 32], strides = [1, 1]} : vector<8x128xf32> to vector<8x32xf32>
    %141 = vector.extract_strided_slice %136 {offsets = [0, 96], sizes = [8, 32], strides = [1, 1]} : vector<8x128xf32> to vector<8x32xf32>
    %142 = arith.mulf %139, %106 : vector<8x32xf32>
    %143 = arith.mulf %138, %140 : vector<8x32xf32>
    %144 = arith.addf %142, %143 : vector<8x32xf32>
    %145 = math.tanh %144 : vector<8x32xf32>
    %146 = arith.mulf %141, %145 : vector<8x32xf32>
    %147 = tpu.concatenate %146, %126 in 1 : vector<8x32xf32>, vector<8x32xf32> -> vector<8x64xf32>
    %cst_34 = arith.constant dense<0.000000e+00> : vector<8x128xf32>
    %148 = tpu.matmul %147, %1, %cst_34 {dimension_numbers = #tpu.dot_dimension_numbers<[1], [0], [0], [1], [0, 0, 1, 1], [], []>} : vector<8x64xf32>, vector<64x128xf32>, vector<8x128xf32> -> vector<8x128xf32>
    %149 = arith.addf %148, %8 : vector<8x128xf32>
    %150 = arith.negf %149 : vector<8x128xf32>
    %151 = math.exp %150 : vector<8x128xf32>
    %cst_35 = arith.constant 1.000000e+00 : f32
    %152 = vector.broadcast %cst_35 : f32 to vector<8x128xf32>
    %153 = arith.addf %152, %151 : vector<8x128xf32>
    %154 = arith.divf %152, %153 : vector<8x128xf32>
    %155 = math.tanh %149 : vector<8x128xf32>
    %156 = vector.extract_strided_slice %154 {offsets = [0, 0], sizes = [8, 32], strides = [1, 1]} : vector<8x128xf32> to vector<8x32xf32>
    %157 = vector.extract_strided_slice %154 {offsets = [0, 32], sizes = [8, 32], strides = [1, 1]} : vector<8x128xf32> to vector<8x32xf32>
    %158 = vector.extract_strided_slice %155 {offsets = [0, 64], sizes = [8, 32], strides = [1, 1]} : vector<8x128xf32> to vector<8x32xf32>
    %159 = vector.extract_strided_slice %154 {offsets = [0, 96], sizes = [8, 32], strides = [1, 1]} : vector<8x128xf32> to vector<8x32xf32>
    %160 = arith.mulf %157, %124 : vector<8x32xf32>
    %161 = arith.mulf %156, %158 : vector<8x32xf32>
    %162 = arith.addf %160, %161 : vector<8x32xf32>
    %163 = math.tanh %162 : vector<8x32xf32>
    %164 = arith.mulf %159, %163 : vector<8x32xf32>
    %c4 = arith.constant 4 : index
    %c0_36 = arith.constant 0 : index
    %c0_37 = arith.constant 0 : index
    %165 = vector.load %arg0[%c4, %c0_36, %c0_37] : memref<8x8x6xf32, #tpu.memory_space<vmem>>, vector<1x8x6xf32>
    %166 = vector.shape_cast %165 : vector<1x8x6xf32> to vector<8x6xf32>
    %167 = tpu.concatenate %166, %146 in 1 : vector<8x6xf32>, vector<8x32xf32> -> vector<8x38xf32>
    %cst_38 = arith.constant dense<0.000000e+00> : vector<8x128xf32>
    %168 = tpu.matmul %167, %0, %cst_38 {dimension_numbers = #tpu.dot_dimension_numbers<[1], [0], [0], [1], [0, 0, 1, 1], [], []>} : vector<8x38xf32>, vector<38x128xf32>, vector<8x128xf32> -> vector<8x128xf32>
    %169 = arith.addf %168, %5 : vector<8x128xf32>
    %170 = arith.negf %169 : vector<8x128xf32>
    %171 = math.exp %170 : vector<8x128xf32>
    %cst_39 = arith.constant 1.000000e+00 : f32
    %172 = vector.broadcast %cst_39 : f32 to vector<8x128xf32>
    %173 = arith.addf %172, %171 : vector<8x128xf32>
    %174 = arith.divf %172, %173 : vector<8x128xf32>
    %175 = math.tanh %169 : vector<8x128xf32>
    %176 = vector.extract_strided_slice %174 {offsets = [0, 0], sizes = [8, 32], strides = [1, 1]} : vector<8x128xf32> to vector<8x32xf32>
    %177 = vector.extract_strided_slice %174 {offsets = [0, 32], sizes = [8, 32], strides = [1, 1]} : vector<8x128xf32> to vector<8x32xf32>
    %178 = vector.extract_strided_slice %175 {offsets = [0, 64], sizes = [8, 32], strides = [1, 1]} : vector<8x128xf32> to vector<8x32xf32>
    %179 = vector.extract_strided_slice %174 {offsets = [0, 96], sizes = [8, 32], strides = [1, 1]} : vector<8x128xf32> to vector<8x32xf32>
    %180 = arith.mulf %177, %144 : vector<8x32xf32>
    %181 = arith.mulf %176, %178 : vector<8x32xf32>
    %182 = arith.addf %180, %181 : vector<8x32xf32>
    %183 = math.tanh %182 : vector<8x32xf32>
    %184 = arith.mulf %179, %183 : vector<8x32xf32>
    %185 = tpu.concatenate %184, %164 in 1 : vector<8x32xf32>, vector<8x32xf32> -> vector<8x64xf32>
    %cst_40 = arith.constant dense<0.000000e+00> : vector<8x128xf32>
    %186 = tpu.matmul %185, %1, %cst_40 {dimension_numbers = #tpu.dot_dimension_numbers<[1], [0], [0], [1], [0, 0, 1, 1], [], []>} : vector<8x64xf32>, vector<64x128xf32>, vector<8x128xf32> -> vector<8x128xf32>
    %187 = arith.addf %186, %8 : vector<8x128xf32>
    %188 = arith.negf %187 : vector<8x128xf32>
    %189 = math.exp %188 : vector<8x128xf32>
    %cst_41 = arith.constant 1.000000e+00 : f32
    %190 = vector.broadcast %cst_41 : f32 to vector<8x128xf32>
    %191 = arith.addf %190, %189 : vector<8x128xf32>
    %192 = arith.divf %190, %191 : vector<8x128xf32>
    %193 = math.tanh %187 : vector<8x128xf32>
    %194 = vector.extract_strided_slice %192 {offsets = [0, 0], sizes = [8, 32], strides = [1, 1]} : vector<8x128xf32> to vector<8x32xf32>
    %195 = vector.extract_strided_slice %192 {offsets = [0, 32], sizes = [8, 32], strides = [1, 1]} : vector<8x128xf32> to vector<8x32xf32>
    %196 = vector.extract_strided_slice %193 {offsets = [0, 64], sizes = [8, 32], strides = [1, 1]} : vector<8x128xf32> to vector<8x32xf32>
    %197 = vector.extract_strided_slice %192 {offsets = [0, 96], sizes = [8, 32], strides = [1, 1]} : vector<8x128xf32> to vector<8x32xf32>
    %198 = arith.mulf %195, %162 : vector<8x32xf32>
    %199 = arith.mulf %194, %196 : vector<8x32xf32>
    %200 = arith.addf %198, %199 : vector<8x32xf32>
    %201 = math.tanh %200 : vector<8x32xf32>
    %202 = arith.mulf %197, %201 : vector<8x32xf32>
    %c5 = arith.constant 5 : index
    %c0_42 = arith.constant 0 : index
    %c0_43 = arith.constant 0 : index
    %203 = vector.load %arg0[%c5, %c0_42, %c0_43] : memref<8x8x6xf32, #tpu.memory_space<vmem>>, vector<1x8x6xf32>
    %204 = vector.shape_cast %203 : vector<1x8x6xf32> to vector<8x6xf32>
    %205 = tpu.concatenate %204, %184 in 1 : vector<8x6xf32>, vector<8x32xf32> -> vector<8x38xf32>
    %cst_44 = arith.constant dense<0.000000e+00> : vector<8x128xf32>
    %206 = tpu.matmul %205, %0, %cst_44 {dimension_numbers = #tpu.dot_dimension_numbers<[1], [0], [0], [1], [0, 0, 1, 1], [], []>} : vector<8x38xf32>, vector<38x128xf32>, vector<8x128xf32> -> vector<8x128xf32>
    %207 = arith.addf %206, %5 : vector<8x128xf32>
    %208 = arith.negf %207 : vector<8x128xf32>
    %209 = math.exp %208 : vector<8x128xf32>
    %cst_45 = arith.constant 1.000000e+00 : f32
    %210 = vector.broadcast %cst_45 : f32 to vector<8x128xf32>
    %211 = arith.addf %210, %209 : vector<8x128xf32>
    %212 = arith.divf %210, %211 : vector<8x128xf32>
    %213 = math.tanh %207 : vector<8x128xf32>
    %214 = vector.extract_strided_slice %212 {offsets = [0, 0], sizes = [8, 32], strides = [1, 1]} : vector<8x128xf32> to vector<8x32xf32>
    %215 = vector.extract_strided_slice %212 {offsets = [0, 32], sizes = [8, 32], strides = [1, 1]} : vector<8x128xf32> to vector<8x32xf32>
    %216 = vector.extract_strided_slice %213 {offsets = [0, 64], sizes = [8, 32], strides = [1, 1]} : vector<8x128xf32> to vector<8x32xf32>
    %217 = vector.extract_strided_slice %212 {offsets = [0, 96], sizes = [8, 32], strides = [1, 1]} : vector<8x128xf32> to vector<8x32xf32>
    %218 = arith.mulf %215, %182 : vector<8x32xf32>
    %219 = arith.mulf %214, %216 : vector<8x32xf32>
    %220 = arith.addf %218, %219 : vector<8x32xf32>
    %221 = math.tanh %220 : vector<8x32xf32>
    %222 = arith.mulf %217, %221 : vector<8x32xf32>
    %223 = tpu.concatenate %222, %202 in 1 : vector<8x32xf32>, vector<8x32xf32> -> vector<8x64xf32>
    %cst_46 = arith.constant dense<0.000000e+00> : vector<8x128xf32>
    %224 = tpu.matmul %223, %1, %cst_46 {dimension_numbers = #tpu.dot_dimension_numbers<[1], [0], [0], [1], [0, 0, 1, 1], [], []>} : vector<8x64xf32>, vector<64x128xf32>, vector<8x128xf32> -> vector<8x128xf32>
    %225 = arith.addf %224, %8 : vector<8x128xf32>
    %226 = arith.negf %225 : vector<8x128xf32>
    %227 = math.exp %226 : vector<8x128xf32>
    %cst_47 = arith.constant 1.000000e+00 : f32
    %228 = vector.broadcast %cst_47 : f32 to vector<8x128xf32>
    %229 = arith.addf %228, %227 : vector<8x128xf32>
    %230 = arith.divf %228, %229 : vector<8x128xf32>
    %231 = math.tanh %225 : vector<8x128xf32>
    %232 = vector.extract_strided_slice %230 {offsets = [0, 0], sizes = [8, 32], strides = [1, 1]} : vector<8x128xf32> to vector<8x32xf32>
    %233 = vector.extract_strided_slice %230 {offsets = [0, 32], sizes = [8, 32], strides = [1, 1]} : vector<8x128xf32> to vector<8x32xf32>
    %234 = vector.extract_strided_slice %231 {offsets = [0, 64], sizes = [8, 32], strides = [1, 1]} : vector<8x128xf32> to vector<8x32xf32>
    %235 = vector.extract_strided_slice %230 {offsets = [0, 96], sizes = [8, 32], strides = [1, 1]} : vector<8x128xf32> to vector<8x32xf32>
    %236 = arith.mulf %233, %200 : vector<8x32xf32>
    %237 = arith.mulf %232, %234 : vector<8x32xf32>
    %238 = arith.addf %236, %237 : vector<8x32xf32>
    %239 = math.tanh %238 : vector<8x32xf32>
    %240 = arith.mulf %235, %239 : vector<8x32xf32>
    %c6 = arith.constant 6 : index
    %c0_48 = arith.constant 0 : index
    %c0_49 = arith.constant 0 : index
    %241 = vector.load %arg0[%c6, %c0_48, %c0_49] : memref<8x8x6xf32, #tpu.memory_space<vmem>>, vector<1x8x6xf32>
    %242 = vector.shape_cast %241 : vector<1x8x6xf32> to vector<8x6xf32>
    %243 = tpu.concatenate %242, %222 in 1 : vector<8x6xf32>, vector<8x32xf32> -> vector<8x38xf32>
    %cst_50 = arith.constant dense<0.000000e+00> : vector<8x128xf32>
    %244 = tpu.matmul %243, %0, %cst_50 {dimension_numbers = #tpu.dot_dimension_numbers<[1], [0], [0], [1], [0, 0, 1, 1], [], []>} : vector<8x38xf32>, vector<38x128xf32>, vector<8x128xf32> -> vector<8x128xf32>
    %245 = arith.addf %244, %5 : vector<8x128xf32>
    %246 = arith.negf %245 : vector<8x128xf32>
    %247 = math.exp %246 : vector<8x128xf32>
    %cst_51 = arith.constant 1.000000e+00 : f32
    %248 = vector.broadcast %cst_51 : f32 to vector<8x128xf32>
    %249 = arith.addf %248, %247 : vector<8x128xf32>
    %250 = arith.divf %248, %249 : vector<8x128xf32>
    %251 = math.tanh %245 : vector<8x128xf32>
    %252 = vector.extract_strided_slice %250 {offsets = [0, 0], sizes = [8, 32], strides = [1, 1]} : vector<8x128xf32> to vector<8x32xf32>
    %253 = vector.extract_strided_slice %250 {offsets = [0, 32], sizes = [8, 32], strides = [1, 1]} : vector<8x128xf32> to vector<8x32xf32>
    %254 = vector.extract_strided_slice %251 {offsets = [0, 64], sizes = [8, 32], strides = [1, 1]} : vector<8x128xf32> to vector<8x32xf32>
    %255 = vector.extract_strided_slice %250 {offsets = [0, 96], sizes = [8, 32], strides = [1, 1]} : vector<8x128xf32> to vector<8x32xf32>
    %256 = arith.mulf %253, %220 : vector<8x32xf32>
    %257 = arith.mulf %252, %254 : vector<8x32xf32>
    %258 = arith.addf %256, %257 : vector<8x32xf32>
    %259 = math.tanh %258 : vector<8x32xf32>
    %260 = arith.mulf %255, %259 : vector<8x32xf32>
    %261 = tpu.concatenate %260, %240 in 1 : vector<8x32xf32>, vector<8x32xf32> -> vector<8x64xf32>
    %cst_52 = arith.constant dense<0.000000e+00> : vector<8x128xf32>
    %262 = tpu.matmul %261, %1, %cst_52 {dimension_numbers = #tpu.dot_dimension_numbers<[1], [0], [0], [1], [0, 0, 1, 1], [], []>} : vector<8x64xf32>, vector<64x128xf32>, vector<8x128xf32> -> vector<8x128xf32>
    %263 = arith.addf %262, %8 : vector<8x128xf32>
    %264 = arith.negf %263 : vector<8x128xf32>
    %265 = math.exp %264 : vector<8x128xf32>
    %cst_53 = arith.constant 1.000000e+00 : f32
    %266 = vector.broadcast %cst_53 : f32 to vector<8x128xf32>
    %267 = arith.addf %266, %265 : vector<8x128xf32>
    %268 = arith.divf %266, %267 : vector<8x128xf32>
    %269 = math.tanh %263 : vector<8x128xf32>
    %270 = vector.extract_strided_slice %268 {offsets = [0, 0], sizes = [8, 32], strides = [1, 1]} : vector<8x128xf32> to vector<8x32xf32>
    %271 = vector.extract_strided_slice %268 {offsets = [0, 32], sizes = [8, 32], strides = [1, 1]} : vector<8x128xf32> to vector<8x32xf32>
    %272 = vector.extract_strided_slice %269 {offsets = [0, 64], sizes = [8, 32], strides = [1, 1]} : vector<8x128xf32> to vector<8x32xf32>
    %273 = vector.extract_strided_slice %268 {offsets = [0, 96], sizes = [8, 32], strides = [1, 1]} : vector<8x128xf32> to vector<8x32xf32>
    %274 = arith.mulf %271, %238 : vector<8x32xf32>
    %275 = arith.mulf %270, %272 : vector<8x32xf32>
    %276 = arith.addf %274, %275 : vector<8x32xf32>
    %277 = math.tanh %276 : vector<8x32xf32>
    %278 = arith.mulf %273, %277 : vector<8x32xf32>
    %c7 = arith.constant 7 : index
    %c0_54 = arith.constant 0 : index
    %c0_55 = arith.constant 0 : index
    %279 = vector.load %arg0[%c7, %c0_54, %c0_55] : memref<8x8x6xf32, #tpu.memory_space<vmem>>, vector<1x8x6xf32>
    %280 = vector.shape_cast %279 : vector<1x8x6xf32> to vector<8x6xf32>
    %281 = tpu.concatenate %280, %260 in 1 : vector<8x6xf32>, vector<8x32xf32> -> vector<8x38xf32>
    %cst_56 = arith.constant dense<0.000000e+00> : vector<8x128xf32>
    %282 = tpu.matmul %281, %0, %cst_56 {dimension_numbers = #tpu.dot_dimension_numbers<[1], [0], [0], [1], [0, 0, 1, 1], [], []>} : vector<8x38xf32>, vector<38x128xf32>, vector<8x128xf32> -> vector<8x128xf32>
    %283 = arith.addf %282, %5 : vector<8x128xf32>
    %284 = arith.negf %283 : vector<8x128xf32>
    %285 = math.exp %284 : vector<8x128xf32>
    %cst_57 = arith.constant 1.000000e+00 : f32
    %286 = vector.broadcast %cst_57 : f32 to vector<8x128xf32>
    %287 = arith.addf %286, %285 : vector<8x128xf32>
    %288 = arith.divf %286, %287 : vector<8x128xf32>
    %289 = math.tanh %283 : vector<8x128xf32>
    %290 = vector.extract_strided_slice %288 {offsets = [0, 0], sizes = [8, 32], strides = [1, 1]} : vector<8x128xf32> to vector<8x32xf32>
    %291 = vector.extract_strided_slice %288 {offsets = [0, 32], sizes = [8, 32], strides = [1, 1]} : vector<8x128xf32> to vector<8x32xf32>
    %292 = vector.extract_strided_slice %289 {offsets = [0, 64], sizes = [8, 32], strides = [1, 1]} : vector<8x128xf32> to vector<8x32xf32>
    %293 = vector.extract_strided_slice %288 {offsets = [0, 96], sizes = [8, 32], strides = [1, 1]} : vector<8x128xf32> to vector<8x32xf32>
    %294 = arith.mulf %291, %258 : vector<8x32xf32>
    %295 = arith.mulf %290, %292 : vector<8x32xf32>
    %296 = arith.addf %294, %295 : vector<8x32xf32>
    %297 = math.tanh %296 : vector<8x32xf32>
    %298 = arith.mulf %293, %297 : vector<8x32xf32>
    %299 = tpu.concatenate %298, %278 in 1 : vector<8x32xf32>, vector<8x32xf32> -> vector<8x64xf32>
    %cst_58 = arith.constant dense<0.000000e+00> : vector<8x128xf32>
    %300 = tpu.matmul %299, %1, %cst_58 {dimension_numbers = #tpu.dot_dimension_numbers<[1], [0], [0], [1], [0, 0, 1, 1], [], []>} : vector<8x64xf32>, vector<64x128xf32>, vector<8x128xf32> -> vector<8x128xf32>
    %301 = arith.addf %300, %8 : vector<8x128xf32>
    %302 = arith.negf %301 : vector<8x128xf32>
    %303 = math.exp %302 : vector<8x128xf32>
    %cst_59 = arith.constant 1.000000e+00 : f32
    %304 = vector.broadcast %cst_59 : f32 to vector<8x128xf32>
    %305 = arith.addf %304, %303 : vector<8x128xf32>
    %306 = arith.divf %304, %305 : vector<8x128xf32>
    %307 = math.tanh %301 : vector<8x128xf32>
    %308 = vector.extract_strided_slice %306 {offsets = [0, 0], sizes = [8, 32], strides = [1, 1]} : vector<8x128xf32> to vector<8x32xf32>
    %309 = vector.extract_strided_slice %306 {offsets = [0, 32], sizes = [8, 32], strides = [1, 1]} : vector<8x128xf32> to vector<8x32xf32>
    %310 = vector.extract_strided_slice %307 {offsets = [0, 64], sizes = [8, 32], strides = [1, 1]} : vector<8x128xf32> to vector<8x32xf32>
    %311 = vector.extract_strided_slice %306 {offsets = [0, 96], sizes = [8, 32], strides = [1, 1]} : vector<8x128xf32> to vector<8x32xf32>
    %312 = arith.mulf %309, %276 : vector<8x32xf32>
    %313 = arith.mulf %308, %310 : vector<8x32xf32>
    %314 = arith.addf %312, %313 : vector<8x32xf32>
    %315 = math.tanh %314 : vector<8x32xf32>
    %316 = arith.mulf %311, %315 : vector<8x32xf32>
    %c7_60 = arith.constant 7 : index
    %c0_61 = arith.constant 0 : index
    %c0_62 = arith.constant 0 : index
    %317 = vector.load %arg0[%c7_60, %c0_61, %c0_62] : memref<8x8x6xf32, #tpu.memory_space<vmem>>, vector<1x8x6xf32>
    %318 = vector.shape_cast %317 : vector<1x8x6xf32> to vector<8x6xf32>
    %319 = tpu.concatenate %318, %298 in 1 : vector<8x6xf32>, vector<8x32xf32> -> vector<8x38xf32>
    %cst_63 = arith.constant dense<0.000000e+00> : vector<8x128xf32>
    %320 = tpu.matmul %319, %0, %cst_63 {dimension_numbers = #tpu.dot_dimension_numbers<[1], [0], [0], [1], [0, 0, 1, 1], [], []>} : vector<8x38xf32>, vector<38x128xf32>, vector<8x128xf32> -> vector<8x128xf32>
    %321 = arith.addf %320, %5 : vector<8x128xf32>
    %322 = arith.negf %321 : vector<8x128xf32>
    %323 = math.exp %322 : vector<8x128xf32>
    %cst_64 = arith.constant 1.000000e+00 : f32
    %324 = vector.broadcast %cst_64 : f32 to vector<8x128xf32>
    %325 = arith.addf %324, %323 : vector<8x128xf32>
    %326 = arith.divf %324, %325 : vector<8x128xf32>
    %327 = math.tanh %321 : vector<8x128xf32>
    %328 = vector.extract_strided_slice %326 {offsets = [0, 0], sizes = [8, 32], strides = [1, 1]} : vector<8x128xf32> to vector<8x32xf32>
    %329 = vector.extract_strided_slice %326 {offsets = [0, 32], sizes = [8, 32], strides = [1, 1]} : vector<8x128xf32> to vector<8x32xf32>
    %330 = vector.extract_strided_slice %327 {offsets = [0, 64], sizes = [8, 32], strides = [1, 1]} : vector<8x128xf32> to vector<8x32xf32>
    %331 = vector.extract_strided_slice %326 {offsets = [0, 96], sizes = [8, 32], strides = [1, 1]} : vector<8x128xf32> to vector<8x32xf32>
    %332 = arith.mulf %329, %296 : vector<8x32xf32>
    %333 = arith.mulf %328, %330 : vector<8x32xf32>
    %334 = arith.addf %332, %333 : vector<8x32xf32>
    %335 = math.tanh %334 : vector<8x32xf32>
    %336 = arith.mulf %331, %335 : vector<8x32xf32>
    %337 = tpu.concatenate %336, %316 in 1 : vector<8x32xf32>, vector<8x32xf32> -> vector<8x64xf32>
    %cst_65 = arith.constant dense<0.000000e+00> : vector<8x128xf32>
    %338 = tpu.matmul %337, %1, %cst_65 {dimension_numbers = #tpu.dot_dimension_numbers<[1], [0], [0], [1], [0, 0, 1, 1], [], []>} : vector<8x64xf32>, vector<64x128xf32>, vector<8x128xf32> -> vector<8x128xf32>
    %339 = arith.addf %338, %8 : vector<8x128xf32>
    %340 = arith.negf %339 : vector<8x128xf32>
    %341 = math.exp %340 : vector<8x128xf32>
    %cst_66 = arith.constant 1.000000e+00 : f32
    %342 = vector.broadcast %cst_66 : f32 to vector<8x128xf32>
    %343 = arith.addf %342, %341 : vector<8x128xf32>
    %344 = arith.divf %342, %343 : vector<8x128xf32>
    %345 = math.tanh %339 : vector<8x128xf32>
    %346 = vector.extract_strided_slice %344 {offsets = [0, 0], sizes = [8, 32], strides = [1, 1]} : vector<8x128xf32> to vector<8x32xf32>
    %347 = vector.extract_strided_slice %344 {offsets = [0, 32], sizes = [8, 32], strides = [1, 1]} : vector<8x128xf32> to vector<8x32xf32>
    %348 = vector.extract_strided_slice %345 {offsets = [0, 64], sizes = [8, 32], strides = [1, 1]} : vector<8x128xf32> to vector<8x32xf32>
    %349 = vector.extract_strided_slice %344 {offsets = [0, 96], sizes = [8, 32], strides = [1, 1]} : vector<8x128xf32> to vector<8x32xf32>
    %350 = arith.mulf %347, %314 : vector<8x32xf32>
    %351 = arith.mulf %346, %348 : vector<8x32xf32>
    %352 = arith.addf %350, %351 : vector<8x32xf32>
    %353 = math.tanh %352 : vector<8x32xf32>
    %354 = arith.mulf %349, %353 : vector<8x32xf32>
    %cst_67 = arith.constant dense<0.000000e+00> : vector<8x6xf32>
    %355 = tpu.matmul %354, %2, %cst_67 {dimension_numbers = #tpu.dot_dimension_numbers<[1], [0], [0], [1], [0, 0, 1, 1], [], []>} : vector<8x32xf32>, vector<32x6xf32>, vector<8x6xf32> -> vector<8x6xf32>
    %356 = arith.addf %355, %11 : vector<8x6xf32>
    %c0_68 = arith.constant 0 : index
    %c0_69 = arith.constant 0 : index
    %c0_70 = arith.constant 0 : index
    %357 = vector.load %arg7[%c0_68, %c0_69, %c0_70] : memref<5x8x6xf32, #tpu.memory_space<vmem>>, vector<1x8x6xf32>
    %358 = vector.shape_cast %357 : vector<1x8x6xf32> to vector<8x6xf32>
    %359 = vector.shape_cast %356 : vector<8x6xf32> to vector<1x8x6xf32>
    tpu.vector_store %arg7[%c0_68, %c0_69, %c0_70], %359 {strides = array<i32>} : memref<5x8x6xf32, #tpu.memory_space<vmem>>, vector<1x8x6xf32>,
    %360 = tpu.concatenate %356, %336 in 1 : vector<8x6xf32>, vector<8x32xf32> -> vector<8x38xf32>
    %cst_71 = arith.constant dense<0.000000e+00> : vector<8x128xf32>
    %361 = tpu.matmul %360, %0, %cst_71 {dimension_numbers = #tpu.dot_dimension_numbers<[1], [0], [0], [1], [0, 0, 1, 1], [], []>} : vector<8x38xf32>, vector<38x128xf32>, vector<8x128xf32> -> vector<8x128xf32>
    %362 = arith.addf %361, %5 : vector<8x128xf32>
    %363 = arith.negf %362 : vector<8x128xf32>
    %364 = math.exp %363 : vector<8x128xf32>
    %cst_72 = arith.constant 1.000000e+00 : f32
    %365 = vector.broadcast %cst_72 : f32 to vector<8x128xf32>
    %366 = arith.addf %365, %364 : vector<8x128xf32>
    %367 = arith.divf %365, %366 : vector<8x128xf32>
    %368 = math.tanh %362 : vector<8x128xf32>
    %369 = vector.extract_strided_slice %367 {offsets = [0, 0], sizes = [8, 32], strides = [1, 1]} : vector<8x128xf32> to vector<8x32xf32>
    %370 = vector.extract_strided_slice %367 {offsets = [0, 32], sizes = [8, 32], strides = [1, 1]} : vector<8x128xf32> to vector<8x32xf32>
    %371 = vector.extract_strided_slice %368 {offsets = [0, 64], sizes = [8, 32], strides = [1, 1]} : vector<8x128xf32> to vector<8x32xf32>
    %372 = vector.extract_strided_slice %367 {offsets = [0, 96], sizes = [8, 32], strides = [1, 1]} : vector<8x128xf32> to vector<8x32xf32>
    %373 = arith.mulf %370, %334 : vector<8x32xf32>
    %374 = arith.mulf %369, %371 : vector<8x32xf32>
    %375 = arith.addf %373, %374 : vector<8x32xf32>
    %376 = math.tanh %375 : vector<8x32xf32>
    %377 = arith.mulf %372, %376 : vector<8x32xf32>
    %378 = tpu.concatenate %377, %354 in 1 : vector<8x32xf32>, vector<8x32xf32> -> vector<8x64xf32>
    %cst_73 = arith.constant dense<0.000000e+00> : vector<8x128xf32>
    %379 = tpu.matmul %378, %1, %cst_73 {dimension_numbers = #tpu.dot_dimension_numbers<[1], [0], [0], [1], [0, 0, 1, 1], [], []>} : vector<8x64xf32>, vector<64x128xf32>, vector<8x128xf32> -> vector<8x128xf32>
    %380 = arith.addf %379, %8 : vector<8x128xf32>
    %381 = arith.negf %380 : vector<8x128xf32>
    %382 = math.exp %381 : vector<8x128xf32>
    %cst_74 = arith.constant 1.000000e+00 : f32
    %383 = vector.broadcast %cst_74 : f32 to vector<8x128xf32>
    %384 = arith.addf %383, %382 : vector<8x128xf32>
    %385 = arith.divf %383, %384 : vector<8x128xf32>
    %386 = math.tanh %380 : vector<8x128xf32>
    %387 = vector.extract_strided_slice %385 {offsets = [0, 0], sizes = [8, 32], strides = [1, 1]} : vector<8x128xf32> to vector<8x32xf32>
    %388 = vector.extract_strided_slice %385 {offsets = [0, 32], sizes = [8, 32], strides = [1, 1]} : vector<8x128xf32> to vector<8x32xf32>
    %389 = vector.extract_strided_slice %386 {offsets = [0, 64], sizes = [8, 32], strides = [1, 1]} : vector<8x128xf32> to vector<8x32xf32>
    %390 = vector.extract_strided_slice %385 {offsets = [0, 96], sizes = [8, 32], strides = [1, 1]} : vector<8x128xf32> to vector<8x32xf32>
    %391 = arith.mulf %388, %352 : vector<8x32xf32>
    %392 = arith.mulf %387, %389 : vector<8x32xf32>
    %393 = arith.addf %391, %392 : vector<8x32xf32>
    %394 = math.tanh %393 : vector<8x32xf32>
    %395 = arith.mulf %390, %394 : vector<8x32xf32>
    %cst_75 = arith.constant dense<0.000000e+00> : vector<8x6xf32>
    %396 = tpu.matmul %395, %2, %cst_75 {dimension_numbers = #tpu.dot_dimension_numbers<[1], [0], [0], [1], [0, 0, 1, 1], [], []>} : vector<8x32xf32>, vector<32x6xf32>, vector<8x6xf32> -> vector<8x6xf32>
    %397 = arith.addf %396, %11 : vector<8x6xf32>
    %c1_76 = arith.constant 1 : index
    %c0_77 = arith.constant 0 : index
    %c0_78 = arith.constant 0 : index
    %398 = vector.load %arg7[%c1_76, %c0_77, %c0_78] : memref<5x8x6xf32, #tpu.memory_space<vmem>>, vector<1x8x6xf32>
    %399 = vector.shape_cast %398 : vector<1x8x6xf32> to vector<8x6xf32>
    %400 = vector.shape_cast %397 : vector<8x6xf32> to vector<1x8x6xf32>
    tpu.vector_store %arg7[%c1_76, %c0_77, %c0_78], %400 {strides = array<i32>} : memref<5x8x6xf32, #tpu.memory_space<vmem>>, vector<1x8x6xf32>,
    %401 = tpu.concatenate %397, %377 in 1 : vector<8x6xf32>, vector<8x32xf32> -> vector<8x38xf32>
    %cst_79 = arith.constant dense<0.000000e+00> : vector<8x128xf32>
    %402 = tpu.matmul %401, %0, %cst_79 {dimension_numbers = #tpu.dot_dimension_numbers<[1], [0], [0], [1], [0, 0, 1, 1], [], []>} : vector<8x38xf32>, vector<38x128xf32>, vector<8x128xf32> -> vector<8x128xf32>
    %403 = arith.addf %402, %5 : vector<8x128xf32>
    %404 = arith.negf %403 : vector<8x128xf32>
    %405 = math.exp %404 : vector<8x128xf32>
    %cst_80 = arith.constant 1.000000e+00 : f32
    %406 = vector.broadcast %cst_80 : f32 to vector<8x128xf32>
    %407 = arith.addf %406, %405 : vector<8x128xf32>
    %408 = arith.divf %406, %407 : vector<8x128xf32>
    %409 = math.tanh %403 : vector<8x128xf32>
    %410 = vector.extract_strided_slice %408 {offsets = [0, 0], sizes = [8, 32], strides = [1, 1]} : vector<8x128xf32> to vector<8x32xf32>
    %411 = vector.extract_strided_slice %408 {offsets = [0, 32], sizes = [8, 32], strides = [1, 1]} : vector<8x128xf32> to vector<8x32xf32>
    %412 = vector.extract_strided_slice %409 {offsets = [0, 64], sizes = [8, 32], strides = [1, 1]} : vector<8x128xf32> to vector<8x32xf32>
    %413 = vector.extract_strided_slice %408 {offsets = [0, 96], sizes = [8, 32], strides = [1, 1]} : vector<8x128xf32> to vector<8x32xf32>
    %414 = arith.mulf %411, %375 : vector<8x32xf32>
    %415 = arith.mulf %410, %412 : vector<8x32xf32>
    %416 = arith.addf %414, %415 : vector<8x32xf32>
    %417 = math.tanh %416 : vector<8x32xf32>
    %418 = arith.mulf %413, %417 : vector<8x32xf32>
    %419 = tpu.concatenate %418, %395 in 1 : vector<8x32xf32>, vector<8x32xf32> -> vector<8x64xf32>
    %cst_81 = arith.constant dense<0.000000e+00> : vector<8x128xf32>
    %420 = tpu.matmul %419, %1, %cst_81 {dimension_numbers = #tpu.dot_dimension_numbers<[1], [0], [0], [1], [0, 0, 1, 1], [], []>} : vector<8x64xf32>, vector<64x128xf32>, vector<8x128xf32> -> vector<8x128xf32>
    %421 = arith.addf %420, %8 : vector<8x128xf32>
    %422 = arith.negf %421 : vector<8x128xf32>
    %423 = math.exp %422 : vector<8x128xf32>
    %cst_82 = arith.constant 1.000000e+00 : f32
    %424 = vector.broadcast %cst_82 : f32 to vector<8x128xf32>
    %425 = arith.addf %424, %423 : vector<8x128xf32>
    %426 = arith.divf %424, %425 : vector<8x128xf32>
    %427 = math.tanh %421 : vector<8x128xf32>
    %428 = vector.extract_strided_slice %426 {offsets = [0, 0], sizes = [8, 32], strides = [1, 1]} : vector<8x128xf32> to vector<8x32xf32>
    %429 = vector.extract_strided_slice %426 {offsets = [0, 32], sizes = [8, 32], strides = [1, 1]} : vector<8x128xf32> to vector<8x32xf32>
    %430 = vector.extract_strided_slice %427 {offsets = [0, 64], sizes = [8, 32], strides = [1, 1]} : vector<8x128xf32> to vector<8x32xf32>
    %431 = vector.extract_strided_slice %426 {offsets = [0, 96], sizes = [8, 32], strides = [1, 1]} : vector<8x128xf32> to vector<8x32xf32>
    %432 = arith.mulf %429, %393 : vector<8x32xf32>
    %433 = arith.mulf %428, %430 : vector<8x32xf32>
    %434 = arith.addf %432, %433 : vector<8x32xf32>
    %435 = math.tanh %434 : vector<8x32xf32>
    %436 = arith.mulf %431, %435 : vector<8x32xf32>
    %cst_83 = arith.constant dense<0.000000e+00> : vector<8x6xf32>
    %437 = tpu.matmul %436, %2, %cst_83 {dimension_numbers = #tpu.dot_dimension_numbers<[1], [0], [0], [1], [0, 0, 1, 1], [], []>} : vector<8x32xf32>, vector<32x6xf32>, vector<8x6xf32> -> vector<8x6xf32>
    %438 = arith.addf %437, %11 : vector<8x6xf32>
    %c2_84 = arith.constant 2 : index
    %c0_85 = arith.constant 0 : index
    %c0_86 = arith.constant 0 : index
    %439 = vector.load %arg7[%c2_84, %c0_85, %c0_86] : memref<5x8x6xf32, #tpu.memory_space<vmem>>, vector<1x8x6xf32>
    %440 = vector.shape_cast %439 : vector<1x8x6xf32> to vector<8x6xf32>
    %441 = vector.shape_cast %438 : vector<8x6xf32> to vector<1x8x6xf32>
    tpu.vector_store %arg7[%c2_84, %c0_85, %c0_86], %441 {strides = array<i32>} : memref<5x8x6xf32, #tpu.memory_space<vmem>>, vector<1x8x6xf32>,
    %442 = tpu.concatenate %438, %418 in 1 : vector<8x6xf32>, vector<8x32xf32> -> vector<8x38xf32>
    %cst_87 = arith.constant dense<0.000000e+00> : vector<8x128xf32>
    %443 = tpu.matmul %442, %0, %cst_87 {dimension_numbers = #tpu.dot_dimension_numbers<[1], [0], [0], [1], [0, 0, 1, 1], [], []>} : vector<8x38xf32>, vector<38x128xf32>, vector<8x128xf32> -> vector<8x128xf32>
    %444 = arith.addf %443, %5 : vector<8x128xf32>
    %445 = arith.negf %444 : vector<8x128xf32>
    %446 = math.exp %445 : vector<8x128xf32>
    %cst_88 = arith.constant 1.000000e+00 : f32
    %447 = vector.broadcast %cst_88 : f32 to vector<8x128xf32>
    %448 = arith.addf %447, %446 : vector<8x128xf32>
    %449 = arith.divf %447, %448 : vector<8x128xf32>
    %450 = math.tanh %444 : vector<8x128xf32>
    %451 = vector.extract_strided_slice %449 {offsets = [0, 0], sizes = [8, 32], strides = [1, 1]} : vector<8x128xf32> to vector<8x32xf32>
    %452 = vector.extract_strided_slice %449 {offsets = [0, 32], sizes = [8, 32], strides = [1, 1]} : vector<8x128xf32> to vector<8x32xf32>
    %453 = vector.extract_strided_slice %450 {offsets = [0, 64], sizes = [8, 32], strides = [1, 1]} : vector<8x128xf32> to vector<8x32xf32>
    %454 = vector.extract_strided_slice %449 {offsets = [0, 96], sizes = [8, 32], strides = [1, 1]} : vector<8x128xf32> to vector<8x32xf32>
    %455 = arith.mulf %452, %416 : vector<8x32xf32>
    %456 = arith.mulf %451, %453 : vector<8x32xf32>
    %457 = arith.addf %455, %456 : vector<8x32xf32>
    %458 = math.tanh %457 : vector<8x32xf32>
    %459 = arith.mulf %454, %458 : vector<8x32xf32>
    %460 = tpu.concatenate %459, %436 in 1 : vector<8x32xf32>, vector<8x32xf32> -> vector<8x64xf32>
    %cst_89 = arith.constant dense<0.000000e+00> : vector<8x128xf32>
    %461 = tpu.matmul %460, %1, %cst_89 {dimension_numbers = #tpu.dot_dimension_numbers<[1], [0], [0], [1], [0, 0, 1, 1], [], []>} : vector<8x64xf32>, vector<64x128xf32>, vector<8x128xf32> -> vector<8x128xf32>
    %462 = arith.addf %461, %8 : vector<8x128xf32>
    %463 = arith.negf %462 : vector<8x128xf32>
    %464 = math.exp %463 : vector<8x128xf32>
    %cst_90 = arith.constant 1.000000e+00 : f32
    %465 = vector.broadcast %cst_90 : f32 to vector<8x128xf32>
    %466 = arith.addf %465, %464 : vector<8x128xf32>
    %467 = arith.divf %465, %466 : vector<8x128xf32>
    %468 = math.tanh %462 : vector<8x128xf32>
    %469 = vector.extract_strided_slice %467 {offsets = [0, 0], sizes = [8, 32], strides = [1, 1]} : vector<8x128xf32> to vector<8x32xf32>
    %470 = vector.extract_strided_slice %467 {offsets = [0, 32], sizes = [8, 32], strides = [1, 1]} : vector<8x128xf32> to vector<8x32xf32>
    %471 = vector.extract_strided_slice %468 {offsets = [0, 64], sizes = [8, 32], strides = [1, 1]} : vector<8x128xf32> to vector<8x32xf32>
    %472 = vector.extract_strided_slice %467 {offsets = [0, 96], sizes = [8, 32], strides = [1, 1]} : vector<8x128xf32> to vector<8x32xf32>
    %473 = arith.mulf %470, %434 : vector<8x32xf32>
    %474 = arith.mulf %469, %471 : vector<8x32xf32>
    %475 = arith.addf %473, %474 : vector<8x32xf32>
    %476 = math.tanh %475 : vector<8x32xf32>
    %477 = arith.mulf %472, %476 : vector<8x32xf32>
    %cst_91 = arith.constant dense<0.000000e+00> : vector<8x6xf32>
    %478 = tpu.matmul %477, %2, %cst_91 {dimension_numbers = #tpu.dot_dimension_numbers<[1], [0], [0], [1], [0, 0, 1, 1], [], []>} : vector<8x32xf32>, vector<32x6xf32>, vector<8x6xf32> -> vector<8x6xf32>
    %479 = arith.addf %478, %11 : vector<8x6xf32>
    %c3_92 = arith.constant 3 : index
    %c0_93 = arith.constant 0 : index
    %c0_94 = arith.constant 0 : index
    %480 = vector.load %arg7[%c3_92, %c0_93, %c0_94] : memref<5x8x6xf32, #tpu.memory_space<vmem>>, vector<1x8x6xf32>
    %481 = vector.shape_cast %480 : vector<1x8x6xf32> to vector<8x6xf32>
    %482 = vector.shape_cast %479 : vector<8x6xf32> to vector<1x8x6xf32>
    tpu.vector_store %arg7[%c3_92, %c0_93, %c0_94], %482 {strides = array<i32>} : memref<5x8x6xf32, #tpu.memory_space<vmem>>, vector<1x8x6xf32>,
    %483 = tpu.concatenate %479, %459 in 1 : vector<8x6xf32>, vector<8x32xf32> -> vector<8x38xf32>
    %cst_95 = arith.constant dense<0.000000e+00> : vector<8x128xf32>
    %484 = tpu.matmul %483, %0, %cst_95 {dimension_numbers = #tpu.dot_dimension_numbers<[1], [0], [0], [1], [0, 0, 1, 1], [], []>} : vector<8x38xf32>, vector<38x128xf32>, vector<8x128xf32> -> vector<8x128xf32>
    %485 = arith.addf %484, %5 : vector<8x128xf32>
    %486 = arith.negf %485 : vector<8x128xf32>
    %487 = math.exp %486 : vector<8x128xf32>
    %cst_96 = arith.constant 1.000000e+00 : f32
    %488 = vector.broadcast %cst_96 : f32 to vector<8x128xf32>
    %489 = arith.addf %488, %487 : vector<8x128xf32>
    %490 = arith.divf %488, %489 : vector<8x128xf32>
    %491 = math.tanh %485 : vector<8x128xf32>
    %492 = vector.extract_strided_slice %490 {offsets = [0, 0], sizes = [8, 32], strides = [1, 1]} : vector<8x128xf32> to vector<8x32xf32>
    %493 = vector.extract_strided_slice %490 {offsets = [0, 32], sizes = [8, 32], strides = [1, 1]} : vector<8x128xf32> to vector<8x32xf32>
    %494 = vector.extract_strided_slice %491 {offsets = [0, 64], sizes = [8, 32], strides = [1, 1]} : vector<8x128xf32> to vector<8x32xf32>
    %495 = vector.extract_strided_slice %490 {offsets = [0, 96], sizes = [8, 32], strides = [1, 1]} : vector<8x128xf32> to vector<8x32xf32>
    %496 = arith.mulf %493, %457 : vector<8x32xf32>
    %497 = arith.mulf %492, %494 : vector<8x32xf32>
    %498 = arith.addf %496, %497 : vector<8x32xf32>
    %499 = math.tanh %498 : vector<8x32xf32>
    %500 = arith.mulf %495, %499 : vector<8x32xf32>
    %501 = tpu.concatenate %500, %477 in 1 : vector<8x32xf32>, vector<8x32xf32> -> vector<8x64xf32>
    %cst_97 = arith.constant dense<0.000000e+00> : vector<8x128xf32>
    %502 = tpu.matmul %501, %1, %cst_97 {dimension_numbers = #tpu.dot_dimension_numbers<[1], [0], [0], [1], [0, 0, 1, 1], [], []>} : vector<8x64xf32>, vector<64x128xf32>, vector<8x128xf32> -> vector<8x128xf32>
    %503 = arith.addf %502, %8 : vector<8x128xf32>
    %504 = arith.negf %503 : vector<8x128xf32>
    %505 = math.exp %504 : vector<8x128xf32>
    %cst_98 = arith.constant 1.000000e+00 : f32
    %506 = vector.broadcast %cst_98 : f32 to vector<8x128xf32>
    %507 = arith.addf %506, %505 : vector<8x128xf32>
    %508 = arith.divf %506, %507 : vector<8x128xf32>
    %509 = math.tanh %503 : vector<8x128xf32>
    %510 = vector.extract_strided_slice %508 {offsets = [0, 0], sizes = [8, 32], strides = [1, 1]} : vector<8x128xf32> to vector<8x32xf32>
    %511 = vector.extract_strided_slice %508 {offsets = [0, 32], sizes = [8, 32], strides = [1, 1]} : vector<8x128xf32> to vector<8x32xf32>
    %512 = vector.extract_strided_slice %509 {offsets = [0, 64], sizes = [8, 32], strides = [1, 1]} : vector<8x128xf32> to vector<8x32xf32>
    %513 = vector.extract_strided_slice %508 {offsets = [0, 96], sizes = [8, 32], strides = [1, 1]} : vector<8x128xf32> to vector<8x32xf32>
    %514 = arith.mulf %511, %475 : vector<8x32xf32>
    %515 = arith.mulf %510, %512 : vector<8x32xf32>
    %516 = arith.addf %514, %515 : vector<8x32xf32>
    %517 = math.tanh %516 : vector<8x32xf32>
    %518 = arith.mulf %513, %517 : vector<8x32xf32>
    %cst_99 = arith.constant dense<0.000000e+00> : vector<8x6xf32>
    %519 = tpu.matmul %518, %2, %cst_99 {dimension_numbers = #tpu.dot_dimension_numbers<[1], [0], [0], [1], [0, 0, 1, 1], [], []>} : vector<8x32xf32>, vector<32x6xf32>, vector<8x6xf32> -> vector<8x6xf32>
    %520 = arith.addf %519, %11 : vector<8x6xf32>
    %c4_100 = arith.constant 4 : index
    %c0_101 = arith.constant 0 : index
    %c0_102 = arith.constant 0 : index
    %521 = vector.load %arg7[%c4_100, %c0_101, %c0_102] : memref<5x8x6xf32, #tpu.memory_space<vmem>>, vector<1x8x6xf32>
    %522 = vector.shape_cast %521 : vector<1x8x6xf32> to vector<8x6xf32>
    %523 = vector.shape_cast %520 : vector<8x6xf32> to vector<1x8x6xf32>
    tpu.vector_store %arg7[%c4_100, %c0_101, %c0_102], %523 {strides = array<i32>} : memref<5x8x6xf32, #tpu.memory_space<vmem>>, vector<1x8x6xf32>,
    return
  }
}

</mosaic_0001>

<bundles_post_ra>
// kernel: tpu_custom_call.1
= control target key start
LH: loop header
LB: loop body
LE: loop exit
PB: predicated region body
PF: predicated region fallthrough
CT: control target
= control target key end

     0   :  { %v4447_v3 = vmov 0.0|0.0   ;;  %vm4448_vm0 = vmmov 0   ;;  %v4449_v6 = vmov 0.0   ;;  %s5217_s0 = inlined_call_operand.vmem [shape: f32[8,8,6], index: 0, kind: input, shape index: {}]   ;;  %s5218_s1 = inlined_call_operand.vmem [shape: f32[38,128], index: 1, kind: input, shape index: {}]   ;;  %s5219_s2 = inlined_call_operand.vmem [shape: f32[1,128], index: 2, kind: input, shape index: {}]   ;;  %s5220_s3 = inlined_call_operand.vmem [shape: f32[64,128], index: 3, kind: input, shape index: {}]   ;;  %s5221_s4 = inlined_call_operand.vmem [shape: f32[1,128], index: 4, kind: input, shape index: {}]   ;;  %s5222_s5 = inlined_call_operand.vmem [shape: f32[32,6], index: 5, kind: input, shape index: {}]   ;;  %s5223_s6 = inlined_call_operand.vmem [shape: f32[1,6], index: 6, kind: input, shape index: {}]   ;;  %s5224_s7 = inlined_call_operand.hbm [shape: f32[5,8,6], index: 7, kind: output, shape index: {}]  }
   0x1   :  { %v27_v0 = vld [vmem:[%s5218_s1] sm:$0xff]  ;;  %v28_v1 = vld [vmem:[%s5218_s1 + $0x8] sm:$0xff]  ;;  %v29_v2 = vld [vmem:[%s5218_s1 + $0x10] sm:$0xff]  ;;  %3939 = vmatprep.subr.bf16.mxu0 %v4447_v3  ;;  %3945 = vmatprep.subr.bf16.mxu1 %v4447_v3 }
   0x2   :  { %v4506_v4 = vpack.c.bf16 %v28_v1, %v27_v0  ;;  %v30_v5 = vld [vmem:[%s5218_s1 + $0x18] sm:$0xff]  ;;  %3478 = vmatprep.mubr.msk.f32.mxu0 %vm4448_vm0, %v4449_v6  ;;  %3497 = vmatprep.mubr.msk.f32.mxu1 %vm4448_vm0, %v4449_v6 }
   0x3   :  { %12 = vsyncpa [#allocation3], 0  ;;  %v4517_v7 = vpack.c.bf16 %v30_v5, %v29_v2  ;;  %v65_v8 = vld [vmem:[%s5217_s0] sm:$0xff]  ;;  %vm66_vm1 = vcmask 48128   ;;  %vm72_vm2 = vcmask 1045504   ;;  %vm68_vm3 = vcmask 310272  }
   0x4   :  { %3941 = vmatpush3.bf16.msra.mxu0 %v4506_v4  ;;  %v4528_v9 = vld [vmem:[%s5218_s1 + $0x20] sm:$0x3f]  ;;  %v67_v10 = vsel %vm66_vm1, %v65_v8, 0.0  ;;  %s4450_s15 = smov 64   ;;  %s4451_s16 = smov 32   ;;  %v33_v26 = vld [vmem:[%s5220_s3 + $0x8] sm:$0xff] }
   0x5   :  { %3942 = vmatprep.subr.bf16.mxu0 %v4447_v3  ;;  %v4547_v11 = vld [vmem:[%s5219_s2] ss:$0 sm:$0xff]  ;;  %v34_v27 = vld [vmem:[%s5220_s3 + $0x10] sm:$0xff]  ;;  %v35_v29 = vld [vmem:[%s5220_s3 + $0x18] sm:$0xff]  ;;  %s4452_s10 = smov 38   ;;  %vm174_vm4 = vcmask 261120  }
   0x6   :  { %v32_v25 = vld [vmem:[%s5220_s3] sm:$0xff]  ;;  %v4570_v30 = vpack.c.bf16 %v35_v29, %v34_v27  ;;  %v37_v32 = vld [vmem:[%s5220_s3 + $0x28] sm:$0xff]  ;;  %v38_v34 = vld [vmem:[%s5220_s3 + $0x30] sm:$0xff]  ;;  %vm176_vm5 = vcmask 523264  }
   0x7   :  { %v4564_v28 = vpack.c.bf16 %v33_v26, %v32_v25  ;;  %v36_v31 = vld [vmem:[%s5220_s3 + $0x20] sm:$0xff]  ;;  %v39_v35 = vld [vmem:[%s5220_s3 + $0x38] sm:$0xff]  ;;  %v3176_v40 = vld [vmem:[%s5217_s0 + $0x8] sm:$0xff] }
   0x8   :  { %3944 = vmatpush3.bf16.msra.mxu0 %v4517_v7  ;;  %v4580_v33 = vpack.c.bf16 %v37_v32, %v36_v31  ;;  %v4591_v37 = vpack.c.bf16 %v39_v35, %v38_v34  ;;  %v4627_v45 = vld [vmem:[%s5221_s4] ss:$0 sm:$0xff] }
   0x9   :  { %3476 = vmatprep.subr.mxu0 %v4449_v6  ;;  %3947 = vmatpush3.bf16.msra.mxu1 %v4564_v28 }
   0xa   :  { %3948 = vmatprep.subr.bf16.mxu1 %v4447_v3 }
   0xc   :  { %3477 = vmatpush3.msk.msra.mxu0 %vm72_vm2, %v4528_v9 }
   0xd   :  { %3479 = vmatmul.mubr.msk.f32.vlgmr.msra.gmra.mrb[0].mxu0 %vm68_vm3, %v67_v10  ;;  %3957 = vmatprep.subr.bf16.mxu0 %v4447_v3 }
   0xe   :  { %3959 = vmatpush3.bf16.msra.mxu0 %v4506_v4  ;;  %3510 = vmatprep.mubr.msk.f32.mxu0 %vm4448_vm0, %v4449_v6 }
   0xf   :  { %3960 = vmatprep.subr.bf16.mxu0 %v4447_v3  ;;  %3950 = vmatpush3.bf16.msra.mxu1 %v4570_v30 }
  0x10   :  { %3951 = vmatprep.subr.bf16.mxu1 %v4447_v3 }
  0x12   :  { %3962 = vmatpush3.bf16.msra.mxu0 %v4517_v7 }
  0x13   :  { %3508 = vmatprep.subr.mxu0 %v4449_v6  ;;  %3953 = vmatpush3.bf16.msra.mxu1 %v4580_v33 }
  0x14   :  { %3954 = vmatprep.subr.bf16.mxu1 %v4447_v3 }
  0x16   :  { %3509 = vmatpush3.msk.msra.mxu0 %vm72_vm2, %v4528_v9 }
  0x17   :  { %3975 = vmatprep.subr.bf16.mxu0 %v4447_v3  ;;  %3956 = vmatpush3.bf16.msra.mxu1 %v4591_v37 }
  0x18   :  { %3963 = vmatprep.subr.bf16.mxu1 %v4447_v3 }
  0xe0   :  { %v142_v12 = vpop.f32.mrb[0].mxu0 }
  0xe1   :  { %v143_v13 = vadd.f32 %v4547_v11, %v142_v12  ;;  %v3480_v14 = vpop.f32.mrb[1].mxu0 }
  0xe3   :  { %4212 = vtanh.f32 %v143_v13  ;;  %v3173_v16 = vmul.f32 -1.442695, %v143_v13 }
  0xe5   :  { %4214 = vpow2.f32 %v3173_v16 }
  0xed   :  { %v4213_v15 = vpop.eup %4212 }
  0xee   :  { %155 = vrot.lane.b32.xlu0 %v4213_v15, %s4450_s15 }
  0xef   :  { %v4215_v17 = vpop.eup %4214 }
  0xf0   :  { %v149_v18 = vadd.f32 1.0, %v4215_v17 }
  0xf2   :  { %4216 = vrcp.f32 %v149_v18 }
  0xfc   :  { %v4217_v19 = vpop.eup %4216 }
  0xfd   :  { %v153_v22 = vmul.f32 0.0, %v4217_v19 }
 0x160   :  { %v156_v20 = vpop.permute.xlu0 %155 }
 0x161   :  { %v158_v21 = vmul.f32 %v4217_v19, %v156_v20 }
 0x163   :  { %160 = vrot.lane.b32.xlu0 %v158_v21, %s4451_s16 }
 0x1d5   :  { %v161_v23 = vpop.permute.xlu0 %160 }
 0x1d6   :  { %v4552_v24 = vadd.f32 %v161_v23, %v153_v22  ;;  %v3182_v23 = vld [vmem:[%s5217_s0 + $0x10] sm:$0xff] }
 0x1d8   :  { %4218 = vtanh.f32 %v4552_v24 }
 0x1e2   :  { %v4219_v36 = vpop.eup %4218 }
 0x1e3   :  { %166 = vrot.lane.b32.xlu1 %v4219_v36, %s4450_s15 }
 0x255   :  { %v167_v38 = vpop.permute.xlu1 %166 }
 0x256   :  { %v169_v39 = vmul.f32 %v4217_v19, %v167_v38 }
 0x258   :  { %276 = vrot.lane.b32.xlu0 %v169_v39, %s4452_s10  ;;  %171 = vrot.lane.b32.xlu1 %v169_v39, %s4451_s16 }
 0x2ca   :  { %v277_v41 = vpop.permute.xlu0 %276  ;;  %v172_v42 = vpop.permute.xlu1 %171 }
 0x2cb   :  { %v279_v43 = vsel %vm66_vm1, %v3176_v40, %v277_v41  ;;  %v175_v44 = vsel %vm174_vm4, %v172_v42, 0.0 }
 0x2cc   :  { %3498 = vmatmul.mubr.msk.f32.vlgmr.msra.gmra.mrb[0].mxu1 %vm176_vm5, %v175_v44  ;;  %3511 = vmatmul.mubr.msk.f32.vlgmr.msra.gmra.mrb[2].mxu0 %vm68_vm3, %v279_v43 }
 0x2cd   :  { %3965 = vmatpush3.bf16.msra.mxu1 %v4564_v28  ;;  %3977 = vmatpush3.bf16.msra.mxu0 %v4506_v4 }
 0x2ce   :  { %3966 = vmatprep.subr.bf16.mxu1 %v4447_v3  ;;  %3978 = vmatprep.subr.bf16.mxu0 %v4447_v3 }
 0x2cf   :  { %3529 = vmatprep.mubr.msk.f32.mxu1 %vm4448_vm0, %v4449_v6  ;;  %3542 = vmatprep.mubr.msk.f32.mxu0 %vm4448_vm0, %v4449_v6 }
 0x2d1   :  { %3968 = vmatpush3.bf16.msra.mxu1 %v4570_v30  ;;  %3980 = vmatpush3.bf16.msra.mxu0 %v4517_v7 }
 0x2d2   :  { %3969 = vmatprep.subr.bf16.mxu1 %v4447_v3  ;;  %3540 = vmatprep.subr.mxu0 %v4449_v6 }
 0x2d5   :  { %3971 = vmatpush3.bf16.msra.mxu1 %v4580_v33  ;;  %3541 = vmatpush3.msk.msra.mxu0 %vm72_vm2, %v4528_v9 }
 0x2d6   :  { %3972 = vmatprep.subr.bf16.mxu1 %v4447_v3  ;;  %3981 = vmatprep.subr.bf16.mxu0 %v4447_v3 }
 0x2d9   :  { %3974 = vmatpush3.bf16.msra.mxu1 %v4591_v37 }
 0x2da   :  { %3993 = vmatprep.subr.bf16.mxu1 %v4447_v3 }
 0x39f   :  { %v246_v46 = vpop.f32.mrb[0].mxu1  ;;  %v349_v47 = vpop.f32.mrb[2].mxu0 }
 0x3a0   :  { %v247_v48 = vadd.f32 %v4627_v45, %v246_v46  ;;  %v350_v49 = vadd.f32 %v4547_v11, %v349_v47  ;;  %v3499_v50 = vpop.f32.mrb[1].mxu1  ;;  %v3512_v51 = vpop.f32.mrb[3].mxu0 }
 0x3a2   :  { %4220 = vtanh.f32 %v247_v48  ;;  %v3175_v54 = vmul.f32 -1.442695, %v247_v48  ;;  %v3179_v55 = vmul.f32 -1.442695, %v350_v49 }
 0x3a3   :  { %4222 = vtanh.f32 %v350_v49 }
 0x3a4   :  { %4224 = vpow2.f32 %v3175_v54 }
 0x3a5   :  { %4226 = vpow2.f32 %v3179_v55 }
 0x3ac   :  { %v4221_v52 = vpop.eup %4220 }
 0x3ad   :  { %v4223_v53 = vpop.eup %4222  ;;  %259 = vrot.lane.b32.xlu1 %v4221_v52, %s4450_s15 }
 0x3ae   :  { %362 = vrot.lane.b32.xlu0 %v4223_v53, %s4450_s15  ;;  %v4225_v56 = vpop.eup %4224 }
 0x3af   :  { %v4227_v57 = vpop.eup %4226  ;;  %v253_v58 = vadd.f32 1.0, %v4225_v56 }
 0x3b0   :  { %v356_v59 = vadd.f32 1.0, %v4227_v57 }
 0x3b1   :  { %4228 = vrcp.f32 %v253_v58 }
 0x3b2   :  { %4230 = vrcp.f32 %v356_v59 }
 0x3bb   :  { %v4229_v60 = vpop.eup %4228 }
 0x3bc   :  { %v4231_v62 = vpop.eup %4230  ;;  %v257_v2 = vmul.f32 0.0, %v4229_v60 }
 0x3bd   :  { %v360_v8 = vmul.f32 %v4231_v62, %v4552_v24 }
 0x41f   :  { %v260_v61 = vpop.permute.xlu1 %259 }
 0x420   :  { %v262_v63 = vmul.f32 %v4229_v60, %v260_v61  ;;  %v363_v0 = vpop.permute.xlu0 %362 }
 0x421   :  { %v365_v1 = vmul.f32 %v4231_v62, %v363_v0 }
 0x422   :  { %264 = vrot.lane.b32.xlu1 %v262_v63, %s4451_s16 }
 0x423   :  { %367 = vrot.lane.b32.xlu0 %v365_v1, %s4451_s16 }
 0x494   :  { %v265_v5 = vpop.permute.xlu1 %264 }
 0x495   :  { %v4636_v10 = vadd.f32 %v265_v5, %v257_v2  ;;  %v368_v12 = vpop.permute.xlu0 %367  ;;  %v3188_v2 = vld [vmem:[%s5217_s0 + $0x18] sm:$0xff] }
 0x496   :  { %v4638_v13 = vadd.f32 %v368_v12, %v360_v8 }
 0x497   :  { %4232 = vtanh.f32 %v4636_v10 }
 0x498   :  { %4234 = vtanh.f32 %v4638_v13 }
 0x4a1   :  { %v4233_v14 = vpop.eup %4232 }
 0x4a2   :  { %v4235_v15 = vpop.eup %4234  ;;  %270 = vrot.lane.b32.xlu1 %v4233_v14, %s4450_s15 }
 0x4a3   :  { %373 = vrot.lane.b32.xlu0 %v4235_v15, %s4450_s15 }
 0x514   :  { %v271_v16 = vpop.permute.xlu1 %270 }
 0x515   :  { %v273_v17 = vmul.f32 %v4229_v60, %v271_v16  ;;  %v374_v18 = vpop.permute.xlu0 %373 }
 0x516   :  { %v376_v19 = vmul.f32 %v4231_v62, %v374_v18 }
 0x517   :  { %382 = vrot.lane.b32.xlu0 %v273_v17, %s4450_s15 }
 0x518   :  { %378 = vrot.lane.b32.xlu1 %v376_v19, %s4451_s16 }
 0x51c   :  { %485 = vrot.lane.b32.xlu1 %v376_v19, %s4452_s10 }
 0x589   :  { %v383_v20 = vpop.permute.xlu0 %382 }
 0x58a   :  { %v379_v21 = vpop.permute.xlu1 %378 }
 0x58b   :  { %v385_v22 = vsel %vm174_vm4, %v379_v21, %v383_v20 }
 0x58c   :  { %3530 = vmatmul.mubr.msk.f32.vlgmr.msra.gmra.mrb[2].mxu1 %vm176_vm5, %v385_v22 }
 0x58d   :  { %3995 = vmatpush3.bf16.msra.mxu1 %v4506_v4  ;;  %3574 = vmatprep.mubr.msk.f32.mxu1 %vm4448_vm0, %v4449_v6 }
 0x58e   :  { %v486_v24 = vpop.permute.xlu1 %485  ;;  %3996 = vmatprep.subr.bf16.mxu1 %v4447_v3 }
 0x58f   :  { %v488_v25 = vsel %vm66_vm1, %v3182_v23, %v486_v24 }
 0x590   :  { %3543 = vmatmul.mubr.msk.f32.vlgmr.msra.gmra.mrb[4].mxu0 %vm68_vm3, %v488_v25 }
 0x591   :  { %3983 = vmatpush3.bf16.msra.mxu0 %v4564_v28  ;;  %3561 = vmatprep.mubr.msk.f32.mxu0 %vm4448_vm0, %v4449_v6 }
 0x592   :  { %3984 = vmatprep.subr.bf16.mxu0 %v4447_v3  ;;  %3998 = vmatpush3.bf16.msra.mxu1 %v4517_v7 }
 0x593   :  { %3572 = vmatprep.subr.mxu1 %v4449_v6 }
 0x595   :  { %3986 = vmatpush3.bf16.msra.mxu0 %v4570_v30 }
 0x596   :  { %3987 = vmatprep.subr.bf16.mxu0 %v4447_v3  ;;  %3573 = vmatpush3.msk.msra.mxu1 %vm72_vm2, %v4528_v9 }
 0x597   :  { %3999 = vmatprep.subr.bf16.mxu1 %v4447_v3 }
 0x599   :  { %3989 = vmatpush3.bf16.msra.mxu0 %v4580_v33 }
 0x59a   :  { %3990 = vmatprep.subr.bf16.mxu0 %v4447_v3 }
 0x59d   :  { %3992 = vmatpush3.bf16.msra.mxu0 %v4591_v37 }
 0x59e   :  { %4011 = vmatprep.subr.bf16.mxu0 %v4447_v3 }
 0x65f   :  { %v455_v26 = vpop.f32.mrb[2].mxu1 }
 0x660   :  { %v456_v27 = vadd.f32 %v4627_v45, %v455_v26  ;;  %v3531_v29 = vpop.f32.mrb[3].mxu1 }
 0x662   :  { %4236 = vtanh.f32 %v456_v27  ;;  %v3181_v38 = vmul.f32 -1.442695, %v456_v27 }
 0x663   :  { %v558_v31 = vpop.f32.mrb[4].mxu0 }
 0x664   :  { %v559_v32 = vadd.f32 %v4547_v11, %v558_v31  ;;  %v3544_v34 = vpop.f32.mrb[5].mxu0 }
 0x666   :  { %4238 = vtanh.f32 %v559_v32  ;;  %v3185_v39 = vmul.f32 -1.442695, %v559_v32 }
 0x667   :  { %4240 = vpow2.f32 %v3181_v38 }
 0x668   :  { %4242 = vpow2.f32 %v3185_v39 }
 0x66c   :  { %v4237_v35 = vpop.eup %4236 }
 0x66d   :  { %468 = vrot.lane.b32.xlu0 %v4237_v35, %s4450_s15 }
 0x670   :  { %v4239_v36 = vpop.eup %4238 }
 0x671   :  { %571 = vrot.lane.b32.xlu1 %v4239_v36, %s4450_s15  ;;  %v4241_v40 = vpop.eup %4240 }
 0x672   :  { %v462_v41 = vadd.f32 1.0, %v4241_v40  ;;  %v4243_v42 = vpop.eup %4242 }
 0x673   :  { %v565_v43 = vadd.f32 1.0, %v4243_v42 }
 0x674   :  { %4244 = vrcp.f32 %v462_v41 }
 0x675   :  { %4246 = vrcp.f32 %v565_v43 }
 0x67e   :  { %v4245_v44 = vpop.eup %4244 }
 0x67f   :  { %v4247_v48 = vpop.eup %4246  ;;  %v466_v51 = vmul.f32 %v4245_v44, %v4636_v10 }
 0x680   :  { %v569_v54 = vmul.f32 %v4247_v48, %v4638_v13 }
 0x6df   :  { %v469_v46 = vpop.permute.xlu0 %468 }
 0x6e0   :  { %v471_v47 = vmul.f32 %v4245_v44, %v469_v46 }
 0x6e2   :  { %473 = vrot.lane.b32.xlu0 %v471_v47, %s4451_s16 }
 0x6e3   :  { %v572_v49 = vpop.permute.xlu1 %571 }
 0x6e4   :  { %v574_v50 = vmul.f32 %v4247_v48, %v572_v49 }
 0x6e6   :  { %576 = vrot.lane.b32.xlu1 %v574_v50, %s4451_s16 }
 0x754   :  { %v474_v52 = vpop.permute.xlu0 %473 }
 0x755   :  { %v4680_v53 = vadd.f32 %v474_v52, %v466_v51  ;;  %v3194_v51 = vld [vmem:[%s5217_s0 + $0x20] sm:$0xff] }
 0x757   :  { %4248 = vtanh.f32 %v4680_v53 }
 0x758   :  { %v577_v55 = vpop.permute.xlu1 %576 }
 0x759   :  { %v4684_v56 = vadd.f32 %v577_v55, %v569_v54 }
 0x75b   :  { %4250 = vtanh.f32 %v4684_v56 }
 0x761   :  { %v4249_v57 = vpop.eup %4248 }
 0x762   :  { %479 = vrot.lane.b32.xlu0 %v4249_v57, %s4450_s15 }
 0x765   :  { %v4251_v58 = vpop.eup %4250 }
 0x766   :  { %582 = vrot.lane.b32.xlu1 %v4251_v58, %s4450_s15 }
 0x7d4   :  { %v480_v59 = vpop.permute.xlu0 %479 }
 0x7d5   :  { %v482_v60 = vmul.f32 %v4245_v44, %v480_v59 }
 0x7d7   :  { %591 = vrot.lane.b32.xlu1 %v482_v60, %s4450_s15 }
 0x7d8   :  { %v583_v61 = vpop.permute.xlu1 %582 }
 0x7d9   :  { %v585_v62 = vmul.f32 %v4247_v48, %v583_v61 }
 0x7db   :  { %587 = vrot.lane.b32.xlu0 %v585_v62, %s4451_s16 }
 0x7df   :  { %694 = vrot.lane.b32.xlu0 %v585_v62, %s4452_s10 }
 0x849   :  { %v592_v63 = vpop.permute.xlu1 %591 }
 0x84d   :  { %v588_v0 = vpop.permute.xlu0 %587 }
 0x84e   :  { %v594_v1 = vsel %vm174_vm4, %v588_v0, %v592_v63 }
 0x84f   :  { %3562 = vmatmul.mubr.msk.f32.vlgmr.msra.gmra.mrb[6].mxu0 %vm176_vm5, %v594_v1 }
 0x850   :  { %4013 = vmatpush3.bf16.msra.mxu0 %v4506_v4  ;;  %3606 = vmatprep.mubr.msk.f32.mxu0 %vm4448_vm0, %v4449_v6 }
 0x851   :  { %v695_v5 = vpop.permute.xlu0 %694  ;;  %4014 = vmatprep.subr.bf16.mxu0 %v4447_v3 }
 0x852   :  { %v697_v8 = vsel %vm66_vm1, %v3188_v2, %v695_v5 }
 0x853   :  { %3575 = vmatmul.mubr.msk.f32.vlgmr.msra.gmra.mrb[4].mxu1 %vm68_vm3, %v697_v8 }
 0x854   :  { %4001 = vmatpush3.bf16.msra.mxu1 %v4564_v28  ;;  %3593 = vmatprep.mubr.msk.f32.mxu1 %vm4448_vm0, %v4449_v6 }
 0x855   :  { %4002 = vmatprep.subr.bf16.mxu1 %v4447_v3  ;;  %4016 = vmatpush3.bf16.msra.mxu0 %v4517_v7 }
 0x856   :  { %3604 = vmatprep.subr.mxu0 %v4449_v6 }
 0x858   :  { %4004 = vmatpush3.bf16.msra.mxu1 %v4570_v30 }
 0x859   :  { %4005 = vmatprep.subr.bf16.mxu1 %v4447_v3  ;;  %3605 = vmatpush3.msk.msra.mxu0 %vm72_vm2, %v4528_v9 }
 0x85a   :  { %4017 = vmatprep.subr.bf16.mxu0 %v4447_v3 }
 0x85c   :  { %4007 = vmatpush3.bf16.msra.mxu1 %v4580_v33 }
 0x85d   :  { %4008 = vmatprep.subr.bf16.mxu1 %v4447_v3 }
 0x860   :  { %4010 = vmatpush3.bf16.msra.mxu1 %v4591_v37 }
 0x861   :  { %4029 = vmatprep.subr.bf16.mxu1 %v4447_v3 }
 0x922   :  { %v664_v10 = vpop.f32.mrb[6].mxu0 }
 0x923   :  { %v665_v12 = vadd.f32 %v4627_v45, %v664_v10  ;;  %v3563_v13 = vpop.f32.mrb[7].mxu0 }
 0x925   :  { %4252 = vtanh.f32 %v665_v12  ;;  %v3187_v19 = vmul.f32 -1.442695, %v665_v12 }
 0x926   :  { %v767_v14 = vpop.f32.mrb[4].mxu1 }
 0x927   :  { %v768_v15 = vadd.f32 %v4547_v11, %v767_v14  ;;  %v3576_v16 = vpop.f32.mrb[5].mxu1 }
 0x929   :  { %4254 = vtanh.f32 %v768_v15  ;;  %v3191_v20 = vmul.f32 -1.442695, %v768_v15 }
 0x92a   :  { %4256 = vpow2.f32 %v3187_v19 }
 0x92b   :  { %4258 = vpow2.f32 %v3191_v20 }
 0x92f   :  { %v4253_v17 = vpop.eup %4252 }
 0x930   :  { %677 = vrot.lane.b32.xlu1 %v4253_v17, %s4450_s15 }
 0x933   :  { %v4255_v18 = vpop.eup %4254 }
 0x934   :  { %780 = vrot.lane.b32.xlu0 %v4255_v18, %s4450_s15  ;;  %v4257_v21 = vpop.eup %4256 }
 0x935   :  { %v671_v22 = vadd.f32 1.0, %v4257_v21  ;;  %v4259_v23 = vpop.eup %4258 }
 0x936   :  { %v774_v24 = vadd.f32 1.0, %v4259_v23 }
 0x937   :  { %4260 = vrcp.f32 %v671_v22 }
 0x938   :  { %4262 = vrcp.f32 %v774_v24 }
 0x941   :  { %v4261_v25 = vpop.eup %4260 }
 0x942   :  { %v4263_v29 = vpop.eup %4262  ;;  %v675_v34 = vmul.f32 %v4261_v25, %v4680_v53 }
 0x943   :  { %v778_v38 = vmul.f32 %v4263_v29, %v4684_v56 }
 0x9a2   :  { %v678_v26 = vpop.permute.xlu1 %677 }
 0x9a3   :  { %v680_v27 = vmul.f32 %v4261_v25, %v678_v26 }
 0x9a5   :  { %682 = vrot.lane.b32.xlu1 %v680_v27, %s4451_s16 }
 0x9a6   :  { %v781_v31 = vpop.permute.xlu0 %780 }
 0x9a7   :  { %v783_v32 = vmul.f32 %v4263_v29, %v781_v31 }
 0x9a9   :  { %785 = vrot.lane.b32.xlu0 %v783_v32, %s4451_s16 }
 0xa17   :  { %v683_v35 = vpop.permute.xlu1 %682 }
 0xa18   :  { %v4725_v36 = vadd.f32 %v683_v35, %v675_v34  ;;  %v3200_v34 = vld [vmem:[%s5217_s0 + $0x28] sm:$0xff] }
 0xa1a   :  { %4264 = vtanh.f32 %v4725_v36 }
 0xa1b   :  { %v786_v39 = vpop.permute.xlu0 %785 }
 0xa1c   :  { %v4729_v40 = vadd.f32 %v786_v39, %v778_v38 }
 0xa1e   :  { %4266 = vtanh.f32 %v4729_v40 }
 0xa24   :  { %v4265_v41 = vpop.eup %4264 }
 0xa25   :  { %688 = vrot.lane.b32.xlu1 %v4265_v41, %s4450_s15 }
 0xa28   :  { %v4267_v42 = vpop.eup %4266 }
 0xa29   :  { %791 = vrot.lane.b32.xlu0 %v4267_v42, %s4450_s15 }
 0xa97   :  { %v689_v43 = vpop.permute.xlu1 %688 }
 0xa98   :  { %v691_v44 = vmul.f32 %v4261_v25, %v689_v43 }
 0xa9a   :  { %800 = vrot.lane.b32.xlu0 %v691_v44, %s4450_s15 }
 0xa9b   :  { %v792_v46 = vpop.permute.xlu0 %791 }
 0xa9c   :  { %v794_v47 = vmul.f32 %v4263_v29, %v792_v46 }
 0xa9e   :  { %796 = vrot.lane.b32.xlu1 %v794_v47, %s4451_s16 }
 0xaa2   :  { %903 = vrot.lane.b32.xlu1 %v794_v47, %s4452_s10 }
 0xb0c   :  { %v801_v48 = vpop.permute.xlu0 %800 }
 0xb10   :  { %v797_v49 = vpop.permute.xlu1 %796 }
 0xb11   :  { %v803_v50 = vsel %vm174_vm4, %v797_v49, %v801_v48 }
 0xb12   :  { %3594 = vmatmul.mubr.msk.f32.vlgmr.msra.gmra.mrb[6].mxu1 %vm176_vm5, %v803_v50 }
 0xb13   :  { %4031 = vmatpush3.bf16.msra.mxu1 %v4506_v4  ;;  %3638 = vmatprep.mubr.msk.f32.mxu1 %vm4448_vm0, %v4449_v6 }
 0xb14   :  { %v904_v52 = vpop.permute.xlu1 %903  ;;  %4032 = vmatprep.subr.bf16.mxu1 %v4447_v3 }
 0xb15   :  { %v906_v53 = vsel %vm66_vm1, %v3194_v51, %v904_v52 }
 0xb16   :  { %3607 = vmatmul.mubr.msk.f32.vlgmr.msra.gmra.mrb[8].mxu0 %vm68_vm3, %v906_v53 }
 0xb17   :  { %4019 = vmatpush3.bf16.msra.mxu0 %v4564_v28  ;;  %3625 = vmatprep.mubr.msk.f32.mxu0 %vm4448_vm0, %v4449_v6 }
 0xb18   :  { %4020 = vmatprep.subr.bf16.mxu0 %v4447_v3  ;;  %4034 = vmatpush3.bf16.msra.mxu1 %v4517_v7 }
 0xb19   :  { %3636 = vmatprep.subr.mxu1 %v4449_v6 }
 0xb1b   :  { %4022 = vmatpush3.bf16.msra.mxu0 %v4570_v30 }
 0xb1c   :  { %4023 = vmatprep.subr.bf16.mxu0 %v4447_v3  ;;  %3637 = vmatpush3.msk.msra.mxu1 %vm72_vm2, %v4528_v9 }
 0xb1d   :  { %4035 = vmatprep.subr.bf16.mxu1 %v4447_v3 }
 0xb1f   :  { %4025 = vmatpush3.bf16.msra.mxu0 %v4580_v33 }
 0xb20   :  { %4026 = vmatprep.subr.bf16.mxu0 %v4447_v3 }
 0xb23   :  { %4028 = vmatpush3.bf16.msra.mxu0 %v4591_v37 }
 0xb24   :  { %4047 = vmatprep.subr.bf16.mxu0 %v4447_v3 }
 0xbe5   :  { %v873_v54 = vpop.f32.mrb[6].mxu1 }
 0xbe6   :  { %v874_v55 = vadd.f32 %v4627_v45, %v873_v54  ;;  %v3595_v56 = vpop.f32.mrb[7].mxu1 }
 0xbe8   :  { %4268 = vtanh.f32 %v874_v55  ;;  %v3193_v62 = vmul.f32 -1.442695, %v874_v55 }
 0xbe9   :  { %v976_v57 = vpop.f32.mrb[8].mxu0 }
 0xbea   :  { %v977_v58 = vadd.f32 %v4547_v11, %v976_v57  ;;  %v3608_v59 = vpop.f32.mrb[9].mxu0 }
 0xbec   :  { %4270 = vtanh.f32 %v977_v58  ;;  %v3197_v63 = vmul.f32 -1.442695, %v977_v58 }
 0xbed   :  { %4272 = vpow2.f32 %v3193_v62 }
 0xbee   :  { %4274 = vpow2.f32 %v3197_v63 }
 0xbf2   :  { %v4269_v60 = vpop.eup %4268 }
 0xbf3   :  { %886 = vrot.lane.b32.xlu0 %v4269_v60, %s4450_s15 }
 0xbf6   :  { %v4271_v61 = vpop.eup %4270 }
 0xbf7   :  { %989 = vrot.lane.b32.xlu1 %v4271_v61, %s4450_s15  ;;  %v4273_v0 = vpop.eup %4272 }
 0xbf8   :  { %v880_v1 = vadd.f32 1.0, %v4273_v0  ;;  %v4275_v2 = vpop.eup %4274 }
 0xbf9   :  { %v983_v5 = vadd.f32 1.0, %v4275_v2 }
 0xbfa   :  { %4276 = vrcp.f32 %v880_v1 }
 0xbfb   :  { %4278 = vrcp.f32 %v983_v5 }
 0xc04   :  { %v4277_v8 = vpop.eup %4276 }
 0xc05   :  { %v4279_v13 = vpop.eup %4278  ;;  %v884_v16 = vmul.f32 %v4277_v8, %v4725_v36 }
 0xc06   :  { %v987_v19 = vmul.f32 %v4279_v13, %v4729_v40 }
 0xc65   :  { %v887_v10 = vpop.permute.xlu0 %886 }
 0xc66   :  { %v889_v12 = vmul.f32 %v4277_v8, %v887_v10 }
 0xc68   :  { %891 = vrot.lane.b32.xlu0 %v889_v12, %s4451_s16 }
 0xc69   :  { %v990_v14 = vpop.permute.xlu1 %989 }
 0xc6a   :  { %v992_v15 = vmul.f32 %v4279_v13, %v990_v14 }
 0xc6c   :  { %994 = vrot.lane.b32.xlu1 %v992_v15, %s4451_s16 }
 0xcda   :  { %v892_v17 = vpop.permute.xlu0 %891 }
 0xcdb   :  { %v4770_v18 = vadd.f32 %v892_v17, %v884_v16  ;;  %v3206_v16 = vld [vmem:[%s5217_s0 + $0x30] sm:$0xff] }
 0xcdd   :  { %4280 = vtanh.f32 %v4770_v18 }
 0xcde   :  { %v995_v20 = vpop.permute.xlu1 %994 }
 0xcdf   :  { %v4774_v21 = vadd.f32 %v995_v20, %v987_v19 }
 0xce1   :  { %4282 = vtanh.f32 %v4774_v21 }
 0xce7   :  { %v4281_v22 = vpop.eup %4280 }
 0xce8   :  { %897 = vrot.lane.b32.xlu0 %v4281_v22, %s4450_s15 }
 0xceb   :  { %v4283_v23 = vpop.eup %4282 }
 0xcec   :  { %1000 = vrot.lane.b32.xlu1 %v4283_v23, %s4450_s15 }
 0xd5a   :  { %v898_v24 = vpop.permute.xlu0 %897 }
 0xd5b   :  { %v900_v25 = vmul.f32 %v4277_v8, %v898_v24 }
 0xd5d   :  { %1009 = vrot.lane.b32.xlu1 %v900_v25, %s4450_s15 }
 0xd5e   :  { %v1001_v26 = vpop.permute.xlu1 %1000 }
 0xd5f   :  { %v1003_v27 = vmul.f32 %v4279_v13, %v1001_v26 }
 0xd61   :  { %1005 = vrot.lane.b32.xlu0 %v1003_v27, %s4451_s16 }
 0xd65   :  { %1112 = vrot.lane.b32.xlu0 %v1003_v27, %s4452_s10 }
 0xdcf   :  { %v1010_v29 = vpop.permute.xlu1 %1009 }
 0xdd3   :  { %v1006_v31 = vpop.permute.xlu0 %1005 }
 0xdd4   :  { %v1012_v32 = vsel %vm174_vm4, %v1006_v31, %v1010_v29 }
 0xdd5   :  { %3626 = vmatmul.mubr.msk.f32.vlgmr.msra.gmra.mrb[10].mxu0 %vm176_vm5, %v1012_v32 }
 0xdd6   :  { %4049 = vmatpush3.bf16.msra.mxu0 %v4506_v4  ;;  %3670 = vmatprep.mubr.msk.f32.mxu0 %vm4448_vm0, %v4449_v6 }
 0xdd7   :  { %v1113_v35 = vpop.permute.xlu0 %1112  ;;  %4050 = vmatprep.subr.bf16.mxu0 %v4447_v3 }
 0xdd8   :  { %v1115_v36 = vsel %vm66_vm1, %v3200_v34, %v1113_v35 }
 0xdd9   :  { %3639 = vmatmul.mubr.msk.f32.vlgmr.msra.gmra.mrb[8].mxu1 %vm68_vm3, %v1115_v36 }
 0xdda   :  { %4037 = vmatpush3.bf16.msra.mxu1 %v4564_v28  ;;  %3657 = vmatprep.mubr.msk.f32.mxu1 %vm4448_vm0, %v4449_v6 }
 0xddb   :  { %4038 = vmatprep.subr.bf16.mxu1 %v4447_v3  ;;  %4052 = vmatpush3.bf16.msra.mxu0 %v4517_v7 }
 0xddc   :  { %3668 = vmatprep.subr.mxu0 %v4449_v6 }
 0xdde   :  { %4040 = vmatpush3.bf16.msra.mxu1 %v4570_v30 }
 0xddf   :  { %4041 = vmatprep.subr.bf16.mxu1 %v4447_v3  ;;  %3669 = vmatpush3.msk.msra.mxu0 %vm72_vm2, %v4528_v9 }
 0xde0   :  { %4053 = vmatprep.subr.bf16.mxu0 %v4447_v3 }
 0xde2   :  { %4043 = vmatpush3.bf16.msra.mxu1 %v4580_v33 }
 0xde3   :  { %4044 = vmatprep.subr.bf16.mxu1 %v4447_v3 }
 0xde6   :  { %4046 = vmatpush3.bf16.msra.mxu1 %v4591_v37 }
 0xde7   :  { %4065 = vmatprep.subr.bf16.mxu1 %v4447_v3 }
 0xea8   :  { %v1082_v38 = vpop.f32.mrb[10].mxu0 }
 0xea9   :  { %v1083_v39 = vadd.f32 %v4627_v45, %v1082_v38  ;;  %v3627_v40 = vpop.f32.mrb[11].mxu0 }
 0xeab   :  { %4284 = vtanh.f32 %v1083_v39  ;;  %v3199_v47 = vmul.f32 -1.442695, %v1083_v39 }
 0xeac   :  { %v1185_v41 = vpop.f32.mrb[8].mxu1 }
 0xead   :  { %v1186_v42 = vadd.f32 %v4547_v11, %v1185_v41  ;;  %v3640_v43 = vpop.f32.mrb[9].mxu1 }
 0xeaf   :  { %4286 = vtanh.f32 %v1186_v42  ;;  %v3203_v48 = vmul.f32 -1.442695, %v1186_v42 }
 0xeb0   :  { %4288 = vpow2.f32 %v3199_v47 }
 0xeb1   :  { %4290 = vpow2.f32 %v3203_v48 }
 0xeb5   :  { %v4285_v44 = vpop.eup %4284 }
 0xeb6   :  { %1095 = vrot.lane.b32.xlu1 %v4285_v44, %s4450_s15 }
 0xeb9   :  { %v4287_v46 = vpop.eup %4286 }
 0xeba   :  { %1198 = vrot.lane.b32.xlu0 %v4287_v46, %s4450_s15  ;;  %v4289_v49 = vpop.eup %4288 }
 0xebb   :  { %v1089_v50 = vadd.f32 1.0, %v4289_v49  ;;  %v4291_v51 = vpop.eup %4290 }
 0xebc   :  { %v1192_v52 = vadd.f32 1.0, %v4291_v51 }
 0xebd   :  { %4292 = vrcp.f32 %v1089_v50 }
 0xebe   :  { %4294 = vrcp.f32 %v1192_v52 }
 0xec7   :  { %v4293_v53 = vpop.eup %4292 }
 0xec8   :  { %v4295_v56 = vpop.eup %4294  ;;  %v1093_v59 = vmul.f32 %v4293_v53, %v4770_v18 }
 0xec9   :  { %v1196_v62 = vmul.f32 %v4295_v56, %v4774_v21 }
 0xf28   :  { %v1096_v54 = vpop.permute.xlu1 %1095 }
 0xf29   :  { %v1098_v55 = vmul.f32 %v4293_v53, %v1096_v54 }
 0xf2b   :  { %1100 = vrot.lane.b32.xlu1 %v1098_v55, %s4451_s16 }
 0xf2c   :  { %v1199_v57 = vpop.permute.xlu0 %1198 }
 0xf2d   :  { %v1201_v58 = vmul.f32 %v4295_v56, %v1199_v57  ;;  %v4877_v57 = vld [vmem:[%s5217_s0 + $0x38] sm:$0xff] }
 0xf2f   :  { %1203 = vrot.lane.b32.xlu0 %v1201_v58, %s4451_s16 }
 0xf9d   :  { %v1101_v60 = vpop.permute.xlu1 %1100 }
 0xf9e   :  { %v4815_v61 = vadd.f32 %v1101_v60, %v1093_v59  ;;  %v4897_v60 = vld [vmem:[%s5218_s1 + $0x20] sm:$0x3f] }
 0xfa0   :  { %4296 = vtanh.f32 %v4815_v61 }
 0xfa1   :  { %v1204_v63 = vpop.permute.xlu0 %1203 }
 0xfa2   :  { %v4819_v0 = vadd.f32 %v1204_v63, %v1196_v62 }
 0xfa4   :  { %4298 = vtanh.f32 %v4819_v0 }
 0xfaa   :  { %v4297_v1 = vpop.eup %4296 }
 0xfab   :  { %1106 = vrot.lane.b32.xlu1 %v4297_v1, %s4450_s15  ;;  %v4910_v1 = vld [vmem:[%s5219_s2] ss:$0 sm:$0xff] }
 0xfae   :  { %v4299_v2 = vpop.eup %4298 }
 0xfaf   :  { %1209 = vrot.lane.b32.xlu0 %v4299_v2, %s4450_s15 }
0x101d   :  { %v1107_v5 = vpop.permute.xlu1 %1106 }
0x101e   :  { %v1109_v8 = vmul.f32 %v4293_v53, %v1107_v5 }
0x1020   :  { %1218 = vrot.lane.b32.xlu0 %v1109_v8, %s4450_s15 }
0x1021   :  { %v1210_v10 = vpop.permute.xlu0 %1209 }
0x1022   :  { %v1212_v12 = vmul.f32 %v4295_v56, %v1210_v10 }
0x1024   :  { %1214 = vrot.lane.b32.xlu1 %v1212_v12, %s4451_s16 }
0x1028   :  { %1321 = vrot.lane.b32.xlu1 %v1212_v12, %s4452_s10 }
0x1092   :  { %v1219_v13 = vpop.permute.xlu0 %1218 }
0x1096   :  { %v1215_v14 = vpop.permute.xlu1 %1214 }
0x1097   :  { %v1221_v15 = vsel %vm174_vm4, %v1215_v14, %v1219_v13 }
0x1098   :  { %3658 = vmatmul.mubr.msk.f32.vlgmr.msra.gmra.mrb[10].mxu1 %vm176_vm5, %v1221_v15 }
0x1099   :  { %4067 = vmatpush3.bf16.msra.mxu1 %v4506_v4  ;;  %3702 = vmatprep.mubr.msk.f32.mxu1 %vm4448_vm0, %v4449_v6 }
0x109a   :  { %v1322_v17 = vpop.permute.xlu1 %1321  ;;  %4068 = vmatprep.subr.bf16.mxu1 %v4447_v3 }
0x109b   :  { %v1324_v18 = vsel %vm66_vm1, %v3206_v16, %v1322_v17 }
0x109c   :  { %3671 = vmatmul.mubr.msk.f32.vlgmr.msra.gmra.mrb[12].mxu0 %vm68_vm3, %v1324_v18 }
0x109d   :  { %4055 = vmatpush3.bf16.msra.mxu0 %v4564_v28  ;;  %3689 = vmatprep.mubr.msk.f32.mxu0 %vm4448_vm0, %v4449_v6 }
0x109e   :  { %4056 = vmatprep.subr.bf16.mxu0 %v4447_v3  ;;  %4070 = vmatpush3.bf16.msra.mxu1 %v4517_v7 }
0x109f   :  { %3700 = vmatprep.subr.mxu1 %v4449_v6 }
0x10a1   :  { %4058 = vmatpush3.bf16.msra.mxu0 %v4570_v30 }
0x10a2   :  { %4059 = vmatprep.subr.bf16.mxu0 %v4447_v3  ;;  %3701 = vmatpush3.msk.msra.mxu1 %vm72_vm2, %v4528_v9 }
0x10a3   :  { %4071 = vmatprep.subr.bf16.mxu1 %v4447_v3 }
0x10a5   :  { %4061 = vmatpush3.bf16.msra.mxu0 %v4580_v33 }
0x10a6   :  { %4062 = vmatprep.subr.bf16.mxu0 %v4447_v3 }
0x10a9   :  { %4064 = vmatpush3.bf16.msra.mxu0 %v4591_v37 }
0x10aa   :  { %4083 = vmatprep.subr.bf16.mxu0 %v4447_v3 }
0x116b   :  { %v1291_v19 = vpop.f32.mrb[10].mxu1 }
0x116c   :  { %v1292_v20 = vadd.f32 %v4627_v45, %v1291_v19  ;;  %v3659_v21 = vpop.f32.mrb[11].mxu1 }
0x116e   :  { %4300 = vtanh.f32 %v1292_v20  ;;  %v3205_v26 = vmul.f32 -1.442695, %v1292_v20 }
0x116f   :  { %v1394_v22 = vpop.f32.mrb[12].mxu0 }
0x1170   :  { %v1395_v23 = vadd.f32 %v4547_v11, %v1394_v22  ;;  %v3672_v24 = vpop.f32.mrb[13].mxu0 }
0x1172   :  { %4302 = vtanh.f32 %v1395_v23  ;;  %v3209_v27 = vmul.f32 -1.442695, %v1395_v23 }
0x1173   :  { %4304 = vpow2.f32 %v3205_v26 }
0x1174   :  { %4306 = vpow2.f32 %v3209_v27 }
0x1178   :  { %v4301_v9 = vpop.eup %4300 }
0x1179   :  { %1304 = vrot.lane.b32.xlu0 %v4301_v9, %s4450_s15 }
0x117c   :  { %v4303_v25 = vpop.eup %4302 }
0x117d   :  { %1407 = vrot.lane.b32.xlu1 %v4303_v25, %s4450_s15  ;;  %v4305_v29 = vpop.eup %4304 }
0x117e   :  { %v1298_v31 = vadd.f32 1.0, %v4305_v29  ;;  %v4307_v32 = vpop.eup %4306 }
0x117f   :  { %v1401_v34 = vadd.f32 1.0, %v4307_v32 }
0x1180   :  { %4308 = vrcp.f32 %v1298_v31 }
0x1181   :  { %4310 = vrcp.f32 %v1401_v34 }
0x118a   :  { %v4309_v35 = vpop.eup %4308 }
0x118b   :  { %v4311_v38 = vpop.eup %4310  ;;  %v1302_v41 = vmul.f32 %v4309_v35, %v4815_v61 }
0x118c   :  { %v1405_v44 = vmul.f32 %v4311_v38, %v4819_v0 }
0x11eb   :  { %v1305_v11 = vpop.permute.xlu0 %1304 }
0x11ec   :  { %v1307_v36 = vmul.f32 %v4309_v35, %v1305_v11 }
0x11ee   :  { %1309 = vrot.lane.b32.xlu0 %v1307_v36, %s4451_s16 }
0x11ef   :  { %v1408_v39 = vpop.permute.xlu1 %1407 }
0x11f0   :  { %v1410_v40 = vmul.f32 %v4311_v38, %v1408_v39 }
0x11f2   :  { %1412 = vrot.lane.b32.xlu1 %v1410_v40, %s4451_s16 }
0x1260   :  { %v1310_v42 = vpop.permute.xlu0 %1309 }
0x1261   :  { %v4860_v43 = vadd.f32 %v1310_v42, %v1302_v41 }
0x1263   :  { %4312 = vtanh.f32 %v4860_v43 }
0x1264   :  { %v1413_v46 = vpop.permute.xlu1 %1412 }
0x1265   :  { %v4864_v47 = vadd.f32 %v1413_v46, %v1405_v44 }
0x1267   :  { %4314 = vtanh.f32 %v4864_v47 }
0x126d   :  { %v4313_v48 = vpop.eup %4312 }
0x126e   :  { %1315 = vrot.lane.b32.xlu0 %v4313_v48, %s4450_s15 }
0x1271   :  { %v4315_v49 = vpop.eup %4314 }
0x1272   :  { %1418 = vrot.lane.b32.xlu1 %v4315_v49, %s4450_s15 }
0x12e0   :  { %v1316_v50 = vpop.permute.xlu0 %1315 }
0x12e1   :  { %v1318_v51 = vmul.f32 %v4309_v35, %v1316_v50 }
0x12e3   :  { %1427 = vrot.lane.b32.xlu1 %v1318_v51, %s4450_s15 }
0x12e4   :  { %v1419_v52 = vpop.permute.xlu1 %1418 }
0x12e5   :  { %v1421_v53 = vmul.f32 %v4311_v38, %v1419_v52 }
0x12e7   :  { %1423 = vrot.lane.b32.xlu0 %v1421_v53, %s4451_s16 }
0x12eb   :  { %1530 = vrot.lane.b32.xlu0 %v1421_v53, %s4452_s10 }
0x1355   :  { %v1428_v54 = vpop.permute.xlu1 %1427 }
0x1359   :  { %v1424_v55 = vpop.permute.xlu0 %1423 }
0x135a   :  { %v1430_v56 = vsel %vm174_vm4, %v1424_v55, %v1428_v54 }
0x135b   :  { %3690 = vmatmul.mubr.msk.f32.vlgmr.msra.gmra.mrb[14].mxu0 %vm176_vm5, %v1430_v56 }
0x135c   :  { %4085 = vmatpush3.bf16.msra.mxu0 %v4506_v4  ;;  %3734 = vmatprep.mubr.msk.f32.mxu0 %vm4448_vm0, %v4449_v6 }
0x135d   :  { %v1531_v58 = vpop.permute.xlu0 %1530  ;;  %4086 = vmatprep.subr.bf16.mxu0 %v4447_v3 }
0x135e   :  { %v1533_v59 = vsel %vm66_vm1, %v4877_v57, %v1531_v58 }
0x135f   :  { %3703 = vmatmul.mubr.msk.f32.vlgmr.msra.gmra.mrb[12].mxu1 %vm68_vm3, %v1533_v59 }
0x1360   :  { %4073 = vmatpush3.bf16.msra.mxu1 %v4564_v28  ;;  %3721 = vmatprep.mubr.msk.f32.mxu1 %vm4448_vm0, %v4449_v6 }
0x1361   :  { %4074 = vmatprep.subr.bf16.mxu1 %v4447_v3  ;;  %4088 = vmatpush3.bf16.msra.mxu0 %v4517_v7 }
0x1362   :  { %3732 = vmatprep.subr.mxu0 %v4449_v6 }
0x1364   :  { %4076 = vmatpush3.bf16.msra.mxu1 %v4570_v30 }
0x1365   :  { %4077 = vmatprep.subr.bf16.mxu1 %v4447_v3  ;;  %3733 = vmatpush3.msk.msra.mxu0 %vm72_vm2, %v4897_v60 }
0x1366   :  { %4089 = vmatprep.subr.bf16.mxu0 %v4447_v3 }
0x1368   :  { %4079 = vmatpush3.bf16.msra.mxu1 %v4580_v33 }
0x1369   :  { %4080 = vmatprep.subr.bf16.mxu1 %v4447_v3 }
0x136c   :  { %4082 = vmatpush3.bf16.msra.mxu1 %v4591_v37 }
0x136d   :  { %4101 = vmatprep.subr.bf16.mxu1 %v4447_v3 }
0x142e   :  { %v1500_v61 = vpop.f32.mrb[14].mxu0 }
0x142f   :  { %v1501_v62 = vadd.f32 %v4627_v45, %v1500_v61  ;;  %v3691_v63 = vpop.f32.mrb[15].mxu0 }
0x1431   :  { %4316 = vtanh.f32 %v1501_v62  ;;  %v3211_v12 = vmul.f32 -1.442695, %v1501_v62 }
0x1432   :  { %v1603_v0 = vpop.f32.mrb[12].mxu1 }
0x1433   :  { %v1604_v2 = vadd.f32 %v4910_v1, %v1603_v0  ;;  %v3704_v5 = vpop.f32.mrb[13].mxu1 }
0x1435   :  { %4318 = vtanh.f32 %v1604_v2  ;;  %v3215_v13 = vmul.f32 -1.442695, %v1604_v2 }
0x1436   :  { %4320 = vpow2.f32 %v3211_v12 }
0x1437   :  { %4322 = vpow2.f32 %v3215_v13 }
0x143b   :  { %v4317_v8 = vpop.eup %4316 }
0x143c   :  { %1513 = vrot.lane.b32.xlu1 %v4317_v8, %s4450_s15 }
0x143f   :  { %v4319_v10 = vpop.eup %4318 }
0x1440   :  { %1616 = vrot.lane.b32.xlu0 %v4319_v10, %s4450_s15  ;;  %v4321_v14 = vpop.eup %4320 }
0x1441   :  { %v1507_v15 = vadd.f32 1.0, %v4321_v14  ;;  %v4323_v16 = vpop.eup %4322 }
0x1442   :  { %v1610_v17 = vadd.f32 1.0, %v4323_v16 }
0x1443   :  { %4324 = vrcp.f32 %v1507_v15 }
0x1444   :  { %4326 = vrcp.f32 %v1610_v17 }
0x144d   :  { %v4325_v18 = vpop.eup %4324 }
0x144e   :  { %v4327_v21 = vpop.eup %4326  ;;  %v1511_v24 = vmul.f32 %v4325_v18, %v4860_v43 }
0x144f   :  { %v1614_v26 = vmul.f32 %v4327_v21, %v4864_v47 }
0x14ae   :  { %v1514_v19 = vpop.permute.xlu1 %1513 }
0x14af   :  { %v1516_v20 = vmul.f32 %v4325_v18, %v1514_v19 }
0x14b1   :  { %1518 = vrot.lane.b32.xlu1 %v1516_v20, %s4451_s16 }
0x14b2   :  { %v1617_v22 = vpop.permute.xlu0 %1616 }
0x14b3   :  { %v1619_v23 = vmul.f32 %v4327_v21, %v1617_v22 }
0x14b5   :  { %1621 = vrot.lane.b32.xlu0 %v1619_v23, %s4451_s16  ;;  %v4977_v23 = vld [vmem:[%s5221_s4] ss:$0 sm:$0xff] }
0x1523   :  { %v1519_v9 = vpop.permute.xlu1 %1518 }
0x1524   :  { %v4918_v25 = vadd.f32 %v1519_v9, %v1511_v24 }
0x1526   :  { %4328 = vtanh.f32 %v4918_v25 }
0x1527   :  { %v1622_v27 = vpop.permute.xlu0 %1621 }
0x1528   :  { %v4922_v29 = vadd.f32 %v1622_v27, %v1614_v26 }
0x152a   :  { %4330 = vtanh.f32 %v4922_v29 }
0x1530   :  { %v4329_v31 = vpop.eup %4328 }
0x1531   :  { %1524 = vrot.lane.b32.xlu1 %v4329_v31, %s4450_s15 }
0x1534   :  { %v4331_v32 = vpop.eup %4330 }
0x1535   :  { %1627 = vrot.lane.b32.xlu0 %v4331_v32, %s4450_s15 }
0x15a3   :  { %v1525_v34 = vpop.permute.xlu1 %1524 }
0x15a4   :  { %v1527_v35 = vmul.f32 %v4325_v18, %v1525_v34 }
0x15a6   :  { %1636 = vrot.lane.b32.xlu0 %v1527_v35, %s4450_s15 }
0x15a7   :  { %v1628_v11 = vpop.permute.xlu0 %1627 }
0x15a8   :  { %v1630_v36 = vmul.f32 %v4327_v21, %v1628_v11 }
0x15aa   :  { %1632 = vrot.lane.b32.xlu1 %v1630_v36, %s4451_s16 }
0x15ae   :  { %1737 = vrot.lane.b32.xlu1 %v1630_v36, %s4452_s10 }
0x1618   :  { %v1637_v38 = vpop.permute.xlu0 %1636 }
0x161c   :  { %v1633_v39 = vpop.permute.xlu1 %1632 }
0x161d   :  { %v1639_v40 = vsel %vm174_vm4, %v1633_v39, %v1637_v38  ;;  %v40_v38 = vld [vmem:[%s5222_s5] sm:$0xff]  ;;  %v41_v39 = vld [vmem:[%s5222_s5 + $0x8] sm:$0xff] }
0x161e   :  { %3722 = vmatmul.mubr.msk.f32.vlgmr.msra.gmra.mrb[14].mxu1 %vm176_vm5, %v1639_v40  ;;  %v42_v40 = vld [vmem:[%s5222_s5 + $0x10] sm:$0xff] }
0x161f   :  { %3764 = vmatprep.mubr.msk.f32.mxu1 %vm4448_vm0, %v4449_v6 }
0x1620   :  { %v1738_v41 = vpop.permute.xlu1 %1737 }
0x1621   :  { %v1740_v42 = vsel %vm66_vm1, %v4877_v57, %v1738_v41  ;;  %v4994_v41 = vpack.c.bf16 %v41_v39, %v40_v38 }
0x1622   :  { %3735 = vmatmul.mubr.msk.f32.vlgmr.msra.gmra.mrb[16].mxu0 %vm68_vm3, %v1740_v42  ;;  %v43_v42 = vld [vmem:[%s5222_s5 + $0x18] sm:$0xff] }
0x1623   :  { %4091 = vmatpush3.bf16.msra.mxu0 %v4564_v28  ;;  %3753 = vmatprep.mubr.msk.f32.mxu0 %vm4448_vm0, %v4449_v6 }
0x1624   :  { %4092 = vmatprep.subr.bf16.mxu0 %v4447_v3  ;;  %4103 = vmatpush3.bf16.msra.mxu1 %v4994_v41 }
0x1625   :  { %4104 = vmatprep.subr.bf16.mxu1 %v4447_v3 }
0x1627   :  { %4094 = vmatpush3.bf16.msra.mxu0 %v4570_v30 }
0x1628   :  { %4095 = vmatprep.subr.bf16.mxu0 %v4447_v3 }
0x162b   :  { %4097 = vmatpush3.bf16.msra.mxu0 %v4580_v33 }
0x162c   :  { %4098 = vmatprep.subr.bf16.mxu0 %v4447_v3 }
0x162f   :  { %4100 = vmatpush3.bf16.msra.mxu0 %v4591_v37 }
0x1630   :  { %4113 = vmatprep.subr.bf16.mxu0 %v4447_v3 }
0x16f1   :  { %v1709_v43 = vpop.f32.mrb[14].mxu1 }
0x16f2   :  { %v1710_v44 = vadd.f32 %v4627_v45, %v1709_v43  ;;  %v3723_v46 = vpop.f32.mrb[15].mxu1  ;;  %v5000_v43 = vpack.c.bf16 %v43_v42, %v42_v40 }
0x16f4   :  { %4332 = vtanh.f32 %v1710_v44  ;;  %v3217_v52 = vmul.f32 -1.442695, %v1710_v44  ;;  %4106 = vmatpush3.bf16.msra.mxu1 %v5000_v43 }
0x16f5   :  { %v1810_v47 = vpop.f32.mrb[16].mxu0  ;;  %4107 = vmatprep.subr.bf16.mxu1 %v4447_v3 }
0x16f6   :  { %v1811_v48 = vadd.f32 %v4910_v1, %v1810_v47  ;;  %v3736_v49 = vpop.f32.mrb[17].mxu0 }
0x16f7   :  { %v5021_v49 = vld [vmem:[%s5223_s6] ss:$0 sm:$0xff]  ;;  %s4453_s6 = smov [#allocation2]  }
0x16f8   :  { %4334 = vtanh.f32 %v1811_v48  ;;  %v3220_v53 = vmul.f32 -1.442695, %v1811_v48 }
0x16f9   :  { %4336 = vpow2.f32 %v3217_v52 }
0x16fa   :  { %4338 = vpow2.f32 %v3220_v53 }
0x16fe   :  { %v4333_v50 = vpop.eup %4332 }
0x16ff   :  { %1722 = vrot.lane.b32.xlu0 %v4333_v50, %s4450_s15 }
0x1702   :  { %v4335_v51 = vpop.eup %4334 }
0x1703   :  { %1823 = vrot.lane.b32.xlu1 %v4335_v51, %s4450_s15  ;;  %v4337_v54 = vpop.eup %4336 }
0x1704   :  { %v1716_v55 = vadd.f32 1.0, %v4337_v54  ;;  %v4339_v45 = vpop.eup %4338 }
0x1705   :  { %v1817_v56 = vadd.f32 1.0, %v4339_v45 }
0x1706   :  { %4340 = vrcp.f32 %v1716_v55 }
0x1707   :  { %4342 = vrcp.f32 %v1817_v56 }
0x1710   :  { %v4341_v57 = vpop.eup %4340 }
0x1711   :  { %v4343_v61 = vpop.eup %4342  ;;  %v1720_v0 = vmul.f32 %v4341_v57, %v4918_v25 }
0x1712   :  { %v1821_v8 = vmul.f32 %v4343_v61, %v4922_v29 }
0x1771   :  { %v1723_v58 = vpop.permute.xlu0 %1722 }
0x1772   :  { %v1725_v59 = vmul.f32 %v4341_v57, %v1723_v58 }
0x1774   :  { %1727 = vrot.lane.b32.xlu0 %v1725_v59, %s4451_s16 }
0x1775   :  { %v1824_v62 = vpop.permute.xlu1 %1823 }
0x1776   :  { %v1826_v63 = vmul.f32 %v4343_v61, %v1824_v62 }
0x1778   :  { %1828 = vrot.lane.b32.xlu1 %v1826_v63, %s4451_s16 }
0x17e6   :  { %v1728_v2 = vpop.permute.xlu0 %1727 }
0x17e7   :  { %v1730_v5 = vadd.f32 %v1728_v2, %v1720_v0 }
0x17e9   :  { %4344 = vtanh.f32 %v1730_v5 }
0x17ea   :  { %v1829_v10 = vpop.permute.xlu1 %1828 }
0x17eb   :  { %v4955_v12 = vadd.f32 %v1829_v10, %v1821_v8 }
0x17ed   :  { %4346 = vtanh.f32 %v4955_v12 }
0x17f3   :  { %v4345_v13 = vpop.eup %4344 }
0x17f4   :  { %1733 = vrot.lane.b32.xlu0 %v4345_v13, %s4450_s15 }
0x17f7   :  { %v4347_v14 = vpop.eup %4346 }
0x17f8   :  { %1834 = vrot.lane.b32.xlu1 %v4347_v14, %s4450_s15 }
0x1866   :  { %v1734_v15 = vpop.permute.xlu0 %1733 }
0x1867   :  { %v1736_v16 = vmul.f32 %v4341_v57, %v1734_v15 }
0x1869   :  { %1843 = vrot.lane.b32.xlu1 %v1736_v16, %s4450_s15 }
0x186a   :  { %v1835_v17 = vpop.permute.xlu1 %1834 }
0x186b   :  { %v1837_v18 = vmul.f32 %v4343_v61, %v1835_v17 }
0x186d   :  { %1839 = vrot.lane.b32.xlu0 %v1837_v18, %s4451_s16 }
0x18db   :  { %v1844_v19 = vpop.permute.xlu1 %1843 }
0x18df   :  { %v1840_v20 = vpop.permute.xlu0 %1839 }
0x18e0   :  { %v1846_v21 = vsel %vm174_vm4, %v1840_v20, %v1844_v19 }
0x18e1   :  { %3754 = vmatmul.mubr.msk.f32.vlgmr.msra.gmra.mrb[18].mxu0 %vm176_vm5, %v1846_v21 }
0x18e2   :  { %4115 = vmatpush3.bf16.msra.mxu0 %v4564_v28  ;;  %3796 = vmatprep.mubr.msk.f32.mxu0 %vm4448_vm0, %v4449_v6 }
0x18e3   :  { %4116 = vmatprep.subr.bf16.mxu0 %v4447_v3 }
0x18e6   :  { %4118 = vmatpush3.bf16.msra.mxu0 %v4570_v30 }
0x18e7   :  { %4119 = vmatprep.subr.bf16.mxu0 %v4447_v3 }
0x18ea   :  { %4121 = vmatpush3.bf16.msra.mxu0 %v4580_v33 }
0x18eb   :  { %4122 = vmatprep.subr.bf16.mxu0 %v4447_v3 }
0x18ee   :  { %4124 = vmatpush3.bf16.msra.mxu0 %v4591_v37 }
0x18ef   :  { %4137 = vmatprep.subr.bf16.mxu0 %v4447_v3 }
0x19b4   :  { %v1916_v22 = vpop.f32.mrb[18].mxu0 }
0x19b5   :  { %v1917_v24 = vadd.f32 %v4977_v23, %v1916_v22  ;;  %v3755_v9 = vpop.f32.mrb[19].mxu0 }
0x19b7   :  { %4348 = vtanh.f32 %v1917_v24  ;;  %v3222_v26 = vmul.f32 -1.442695, %v1917_v24 }
0x19b9   :  { %4350 = vpow2.f32 %v3222_v26 }
0x19c1   :  { %v4349_v25 = vpop.eup %4348 }
0x19c2   :  { %1929 = vrot.lane.b32.xlu0 %v4349_v25, %s4450_s15 }
0x19c3   :  { %v4351_v27 = vpop.eup %4350 }
0x19c4   :  { %v1923_v29 = vadd.f32 1.0, %v4351_v27 }
0x19c6   :  { %4352 = vrcp.f32 %v1923_v29 }
0x19d0   :  { %v4353_v31 = vpop.eup %4352 }
0x19d1   :  { %v1927_v35 = vmul.f32 %v4353_v31, %v1730_v5 }
0x1a34   :  { %v1930_v32 = vpop.permute.xlu0 %1929 }
0x1a35   :  { %v1932_v34 = vmul.f32 %v4353_v31, %v1930_v32 }
0x1a37   :  { %1934 = vrot.lane.b32.xlu1 %v1932_v34, %s4451_s16 }
0x1aa9   :  { %v1935_v11 = vpop.permute.xlu1 %1934 }
0x1aaa   :  { %v4982_v36 = vadd.f32 %v1935_v11, %v1927_v35 }
0x1aac   :  { %4354 = vtanh.f32 %v4982_v36 }
0x1ab6   :  { %v4355_v44 = vpop.eup %4354 }
0x1ab7   :  { %1940 = vrot.lane.b32.xlu0 %v4355_v44, %s4450_s15 }
0x1abb   :  { %2020 = vrot.lane.b32.xlu0 %v1837_v18, %s4452_s10 }
0x1b29   :  { %v1941_v46 = vpop.permute.xlu0 %1940 }
0x1b2a   :  { %v1943_v47 = vmul.f32 %v4353_v31, %v1941_v46 }
0x1b2c   :  { %1945 = vrot.lane.b32.xlu1 %v1943_v47, %s4451_s16 }
0x1b2d   :  { %v2021_v53 = vpop.permute.xlu0 %2020 }
0x1b9e   :  { %v1946_v48 = vpop.permute.xlu1 %1945 }
0x1b9f   :  { %3765 = vmatmul.mubr.msk.f32.vlgmr.msra.gmra.mrb[16].mxu1 %vm174_vm4, %v1946_v48 }
0x1ba0   :  { %4109 = vmatpush3.bf16.msra.mxu1 %v4506_v4  ;;  %3777 = vmatprep.mubr.msk.f32.mxu1 %vm4448_vm0, %v4449_v6 }
0x1ba1   :  { %4110 = vmatprep.subr.bf16.mxu1 %v4447_v3 }
0x1ba4   :  { %4112 = vmatpush3.bf16.msra.mxu1 %v4517_v7 }
0x1ba5   :  { %3775 = vmatprep.subr.mxu1 %v4449_v6 }
0x1ba8   :  { %3776 = vmatpush3.msk.msra.mxu1 %vm72_vm2, %v4897_v60 }
0x1ba9   :  { %4125 = vmatprep.subr.bf16.mxu1 %v4447_v3 }
0x1c72   :  { %v2015_v50 = vpop.f32.mrb[16].mxu1 }
0x1c73   :  { %v2016_v51 = vadd.f32 %v5021_v49, %v2015_v50  ;;  %v3766_v52 = vpop.f32.mrb[17].mxu1 }
0x1c75   :  { %2019 = vst.msk [vmem:[#allocation2] sm:$0xff] %vm66_vm1, %v2016_v51  ;;  %v2023_v54 = vsel %vm66_vm1, %v2016_v51, %v2021_v53 }
0x1c76   :  { %3778 = vmatmul.mubr.msk.f32.vlgmr.msra.gmra.mrb[18].mxu1 %vm68_vm3, %v2023_v54 }
0x1c77   :  { %4127 = vmatpush3.bf16.msra.mxu1 %v4994_v41  ;;  %3807 = vmatprep.mubr.msk.f32.mxu1 %vm4448_vm0, %v4449_v6 }
0x1c78   :  { %4128 = vmatprep.subr.bf16.mxu1 %v4447_v3 }
0x1c7b   :  { %4130 = vmatpush3.bf16.msra.mxu1 %v5000_v43 }
0x1c7c   :  { %4131 = vmatprep.subr.bf16.mxu1 %v4447_v3 }
0x1d49   :  { %v2093_v55 = vpop.f32.mrb[18].mxu1 }
0x1d4a   :  { %v2094_v45 = vadd.f32 %v4910_v1, %v2093_v55  ;;  %v3779_v56 = vpop.f32.mrb[19].mxu1 }
0x1d4c   :  { %4356 = vtanh.f32 %v2094_v45  ;;  %v3226_v58 = vmul.f32 -1.442695, %v2094_v45 }
0x1d4e   :  { %4358 = vpow2.f32 %v3226_v58 }
0x1d56   :  { %v4357_v57 = vpop.eup %4356 }
0x1d57   :  { %2106 = vrot.lane.b32.xlu1 %v4357_v57, %s4450_s15 }
0x1d58   :  { %v4359_v59 = vpop.eup %4358 }
0x1d59   :  { %v2100_v61 = vadd.f32 1.0, %v4359_v59 }
0x1d5b   :  { %4360 = vrcp.f32 %v2100_v61 }
0x1d65   :  { %v4361_v62 = vpop.eup %4360 }
0x1d66   :  { %v2104_v2 = vmul.f32 %v4361_v62, %v4955_v12 }
0x1dc9   :  { %v2107_v63 = vpop.permute.xlu1 %2106 }
0x1dca   :  { %v2109_v0 = vmul.f32 %v4361_v62, %v2107_v63 }
0x1dcc   :  { %2111 = vrot.lane.b32.xlu0 %v2109_v0, %s4451_s16 }
0x1e3e   :  { %v2112_v5 = vpop.permute.xlu0 %2111 }
0x1e3f   :  { %v5037_v8 = vadd.f32 %v2112_v5, %v2104_v2 }
0x1e41   :  { %4362 = vtanh.f32 %v5037_v8 }
0x1e4b   :  { %v4363_v10 = vpop.eup %4362 }
0x1e4c   :  { %2117 = vrot.lane.b32.xlu1 %v4363_v10, %s4450_s15 }
0x1e50   :  { %2125 = vrot.lane.b32.xlu1 %v1943_v47, %s4450_s15 }
0x1ebe   :  { %v2118_v13 = vpop.permute.xlu1 %2117 }
0x1ebf   :  { %v2120_v14 = vmul.f32 %v4361_v62, %v2118_v13 }
0x1ec1   :  { %2122 = vrot.lane.b32.xlu0 %v2120_v14, %s4451_s16 }
0x1ec2   :  { %v2126_v15 = vpop.permute.xlu1 %2125 }
0x1f33   :  { %v2123_v16 = vpop.permute.xlu0 %2122 }
0x1f34   :  { %v2128_v17 = vsel %vm174_vm4, %v2123_v16, %v2126_v15 }
0x1f35   :  { %3797 = vmatmul.mubr.msk.f32.vlgmr.msra.gmra.mrb[20].mxu0 %vm176_vm5, %v2128_v17 }
0x1f36   :  { %4139 = vmatpush3.bf16.msra.mxu0 %v4564_v28  ;;  %3839 = vmatprep.mubr.msk.f32.mxu0 %vm4448_vm0, %v4449_v6 }
0x1f37   :  { %4140 = vmatprep.subr.bf16.mxu0 %v4447_v3 }
0x1f3a   :  { %4142 = vmatpush3.bf16.msra.mxu0 %v4570_v30 }
0x1f3b   :  { %4143 = vmatprep.subr.bf16.mxu0 %v4447_v3 }
0x1f3e   :  { %4145 = vmatpush3.bf16.msra.mxu0 %v4580_v33 }
0x1f3f   :  { %4146 = vmatprep.subr.bf16.mxu0 %v4447_v3 }
0x1f42   :  { %4148 = vmatpush3.bf16.msra.mxu0 %v4591_v37 }
0x1f43   :  { %4161 = vmatprep.subr.bf16.mxu0 %v4447_v3 }
0x2008   :  { %v2198_v12 = vpop.f32.mrb[20].mxu0 }
0x2009   :  { %v2199_v18 = vadd.f32 %v4977_v23, %v2198_v12  ;;  %v3798_v19 = vpop.f32.mrb[21].mxu0 }
0x200b   :  { %4364 = vtanh.f32 %v2199_v18  ;;  %v3228_v21 = vmul.f32 -1.442695, %v2199_v18 }
0x200d   :  { %4366 = vpow2.f32 %v3228_v21 }
0x2015   :  { %v4365_v20 = vpop.eup %4364 }
0x2016   :  { %2211 = vrot.lane.b32.xlu0 %v4365_v20, %s4450_s15 }
0x2017   :  { %v4367_v22 = vpop.eup %4366 }
0x2018   :  { %v2205_v24 = vadd.f32 1.0, %v4367_v22 }
0x201a   :  { %4368 = vrcp.f32 %v2205_v24 }
0x2024   :  { %v4369_v9 = vpop.eup %4368 }
0x2025   :  { %v2209_v27 = vmul.f32 %v4369_v9, %v4982_v36 }
0x2088   :  { %v2212_v25 = vpop.permute.xlu0 %2211 }
0x2089   :  { %v2214_v26 = vmul.f32 %v4369_v9, %v2212_v25 }
0x208b   :  { %2216 = vrot.lane.b32.xlu1 %v2214_v26, %s4451_s16 }
0x20fd   :  { %v2217_v29 = vpop.permute.xlu1 %2216 }
0x20fe   :  { %v5059_v31 = vadd.f32 %v2217_v29, %v2209_v27 }
0x2100   :  { %4370 = vtanh.f32 %v5059_v31 }
0x210a   :  { %v4371_v32 = vpop.eup %4370 }
0x210b   :  { %2222 = vrot.lane.b32.xlu0 %v4371_v32, %s4450_s15 }
0x210f   :  { %2303 = vrot.lane.b32.xlu0 %v2120_v14, %s4452_s10 }
0x217d   :  { %v2223_v34 = vpop.permute.xlu0 %2222 }
0x217e   :  { %v2225_v35 = vmul.f32 %v4369_v9, %v2223_v34 }
0x2180   :  { %2227 = vrot.lane.b32.xlu1 %v2225_v35, %s4451_s16 }
0x2181   :  { %v2304_v40 = vpop.permute.xlu0 %2303 }
0x21f2   :  { %v2228_v11 = vpop.permute.xlu1 %2227 }
0x21f3   :  { %3808 = vmatmul.mubr.msk.f32.vlgmr.msra.gmra.mrb[20].mxu1 %vm174_vm4, %v2228_v11 }
0x21f4   :  { %4133 = vmatpush3.bf16.msra.mxu1 %v4506_v4  ;;  %3820 = vmatprep.mubr.msk.f32.mxu1 %vm4448_vm0, %v4449_v6 }
0x21f5   :  { %4134 = vmatprep.subr.bf16.mxu1 %v4447_v3 }
0x21f8   :  { %4136 = vmatpush3.bf16.msra.mxu1 %v4517_v7 }
0x21f9   :  { %3818 = vmatprep.subr.mxu1 %v4449_v6 }
0x21fc   :  { %3819 = vmatpush3.msk.msra.mxu1 %vm72_vm2, %v4897_v60 }
0x21fd   :  { %4149 = vmatprep.subr.bf16.mxu1 %v4447_v3 }
0x22c6   :  { %v2297_v36 = vpop.f32.mrb[20].mxu1 }
0x22c7   :  { %v2298_v38 = vadd.f32 %v5021_v49, %v2297_v36  ;;  %v3809_v39 = vpop.f32.mrb[21].mxu1 }
0x22c9   :  { %2302 = vst.msk [vmem:[#allocation2 + $0x8] sm:$0xff] %vm66_vm1, %v2298_v38  ;;  %v2306_v42 = vsel %vm66_vm1, %v2298_v38, %v2304_v40 }
0x22ca   :  { %3821 = vmatmul.mubr.msk.f32.vlgmr.msra.gmra.mrb[22].mxu1 %vm68_vm3, %v2306_v42 }
0x22cb   :  { %4151 = vmatpush3.bf16.msra.mxu1 %v4994_v41  ;;  %3850 = vmatprep.mubr.msk.f32.mxu1 %vm4448_vm0, %v4449_v6 }
0x22cc   :  { %4152 = vmatprep.subr.bf16.mxu1 %v4447_v3 }
0x22cf   :  { %4154 = vmatpush3.bf16.msra.mxu1 %v5000_v43 }
0x22d0   :  { %4155 = vmatprep.subr.bf16.mxu1 %v4447_v3 }
0x239d   :  { %v2376_v44 = vpop.f32.mrb[22].mxu1 }
0x239e   :  { %v2377_v46 = vadd.f32 %v4910_v1, %v2376_v44  ;;  %v3822_v47 = vpop.f32.mrb[23].mxu1 }
0x23a0   :  { %4372 = vtanh.f32 %v2377_v46  ;;  %v3232_v50 = vmul.f32 -1.442695, %v2377_v46 }
0x23a2   :  { %4374 = vpow2.f32 %v3232_v50 }
0x23aa   :  { %v4373_v48 = vpop.eup %4372 }
0x23ab   :  { %2389 = vrot.lane.b32.xlu1 %v4373_v48, %s4450_s15 }
0x23ac   :  { %v4375_v51 = vpop.eup %4374 }
0x23ad   :  { %v2383_v52 = vadd.f32 1.0, %v4375_v51 }
0x23af   :  { %4376 = vrcp.f32 %v2383_v52 }
0x23b9   :  { %v4377_v53 = vpop.eup %4376 }
0x23ba   :  { %v2387_v45 = vmul.f32 %v4377_v53, %v5037_v8 }
0x241d   :  { %v2390_v54 = vpop.permute.xlu1 %2389 }
0x241e   :  { %v2392_v55 = vmul.f32 %v4377_v53, %v2390_v54 }
0x2420   :  { %2394 = vrot.lane.b32.xlu0 %v2392_v55, %s4451_s16 }
0x2492   :  { %v2395_v56 = vpop.permute.xlu0 %2394 }
0x2493   :  { %v5089_v57 = vadd.f32 %v2395_v56, %v2387_v45 }
0x2495   :  { %4378 = vtanh.f32 %v5089_v57 }
0x249f   :  { %v4379_v58 = vpop.eup %4378 }
0x24a0   :  { %2400 = vrot.lane.b32.xlu1 %v4379_v58, %s4450_s15 }
0x24a4   :  { %2408 = vrot.lane.b32.xlu1 %v2225_v35, %s4450_s15 }
0x2512   :  { %v2401_v59 = vpop.permute.xlu1 %2400 }
0x2513   :  { %v2403_v61 = vmul.f32 %v4377_v53, %v2401_v59 }
0x2515   :  { %2405 = vrot.lane.b32.xlu0 %v2403_v61, %s4451_s16 }
0x2516   :  { %v2409_v62 = vpop.permute.xlu1 %2408 }
0x2587   :  { %v2406_v63 = vpop.permute.xlu0 %2405 }
0x2588   :  { %v2411_v0 = vsel %vm174_vm4, %v2406_v63, %v2409_v62 }
0x2589   :  { %3840 = vmatmul.mubr.msk.f32.vlgmr.msra.gmra.mrb[22].mxu0 %vm176_vm5, %v2411_v0 }
0x258a   :  { %4163 = vmatpush3.bf16.msra.mxu0 %v4564_v28  ;;  %3882 = vmatprep.mubr.msk.f32.mxu0 %vm4448_vm0, %v4449_v6 }
0x258b   :  { %4164 = vmatprep.subr.bf16.mxu0 %v4447_v3 }
0x258e   :  { %4166 = vmatpush3.bf16.msra.mxu0 %v4570_v30 }
0x258f   :  { %4167 = vmatprep.subr.bf16.mxu0 %v4447_v3 }
0x2592   :  { %4169 = vmatpush3.bf16.msra.mxu0 %v4580_v33 }
0x2593   :  { %4170 = vmatprep.subr.bf16.mxu0 %v4447_v3 }
0x2596   :  { %4172 = vmatpush3.bf16.msra.mxu0 %v4591_v37 }
0x2597   :  { %4179 = vmatprep.subr.bf16.mxu0 %v4447_v3 }
0x265c   :  { %v2481_v2 = vpop.f32.mrb[22].mxu0 }
0x265d   :  { %v2482_v5 = vadd.f32 %v4977_v23, %v2481_v2  ;;  %v3841_v8 = vpop.f32.mrb[23].mxu0 }
0x265f   :  { %4380 = vtanh.f32 %v2482_v5  ;;  %v3234_v13 = vmul.f32 -1.442695, %v2482_v5 }
0x2661   :  { %4382 = vpow2.f32 %v3234_v13 }
0x2669   :  { %v4381_v10 = vpop.eup %4380 }
0x266a   :  { %2494 = vrot.lane.b32.xlu0 %v4381_v10, %s4450_s15 }
0x266b   :  { %v4383_v14 = vpop.eup %4382 }
0x266c   :  { %v2488_v15 = vadd.f32 1.0, %v4383_v14 }
0x266e   :  { %4384 = vrcp.f32 %v2488_v15 }
0x2678   :  { %v4385_v16 = vpop.eup %4384 }
0x2679   :  { %v2492_v18 = vmul.f32 %v4385_v16, %v5059_v31 }
0x26dc   :  { %v2495_v17 = vpop.permute.xlu0 %2494 }
0x26dd   :  { %v2497_v12 = vmul.f32 %v4385_v16, %v2495_v17 }
0x26df   :  { %2499 = vrot.lane.b32.xlu1 %v2497_v12, %s4451_s16 }
0x2751   :  { %v2500_v19 = vpop.permute.xlu1 %2499 }
0x2752   :  { %v5111_v20 = vadd.f32 %v2500_v19, %v2492_v18 }
0x2754   :  { %4386 = vtanh.f32 %v5111_v20 }
0x275e   :  { %v4387_v21 = vpop.eup %4386 }
0x275f   :  { %2505 = vrot.lane.b32.xlu0 %v4387_v21, %s4450_s15 }
0x2763   :  { %2586 = vrot.lane.b32.xlu0 %v2403_v61, %s4452_s10 }
0x27d1   :  { %v2506_v22 = vpop.permute.xlu0 %2505 }
0x27d2   :  { %v2508_v24 = vmul.f32 %v4385_v16, %v2506_v22 }
0x27d4   :  { %2510 = vrot.lane.b32.xlu1 %v2508_v24, %s4451_s16 }
0x27d5   :  { %v2587_v29 = vpop.permute.xlu0 %2586 }
0x2846   :  { %v2511_v9 = vpop.permute.xlu1 %2510 }
0x2847   :  { %3851 = vmatmul.mubr.msk.f32.vlgmr.msra.gmra.mrb[24].mxu1 %vm174_vm4, %v2511_v9 }
0x2848   :  { %4157 = vmatpush3.bf16.msra.mxu1 %v4506_v4  ;;  %3863 = vmatprep.mubr.msk.f32.mxu1 %vm4448_vm0, %v4449_v6 }
0x2849   :  { %4158 = vmatprep.subr.bf16.mxu1 %v4447_v3 }
0x284c   :  { %4160 = vmatpush3.bf16.msra.mxu1 %v4517_v7 }
0x284d   :  { %3861 = vmatprep.subr.mxu1 %v4449_v6 }
0x2850   :  { %3862 = vmatpush3.msk.msra.mxu1 %vm72_vm2, %v4897_v60 }
0x2851   :  { %4173 = vmatprep.subr.bf16.mxu1 %v4447_v3 }
0x291a   :  { %v2580_v25 = vpop.f32.mrb[24].mxu1 }
0x291b   :  { %v2581_v26 = vadd.f32 %v5021_v49, %v2580_v25  ;;  %v3852_v27 = vpop.f32.mrb[25].mxu1 }
0x291d   :  { %2585 = vst.msk [vmem:[#allocation2 + $0x10] sm:$0xff] %vm66_vm1, %v2581_v26  ;;  %v2589_v31 = vsel %vm66_vm1, %v2581_v26, %v2587_v29 }
0x291e   :  { %3864 = vmatmul.mubr.msk.f32.vlgmr.msra.gmra.mrb[26].mxu1 %vm68_vm3, %v2589_v31 }
0x291f   :  { %4175 = vmatpush3.bf16.msra.mxu1 %v4994_v41  ;;  %3893 = vmatprep.mubr.msk.f32.mxu1 %vm4448_vm0, %v4449_v6 }
0x2920   :  { %4176 = vmatprep.subr.bf16.mxu1 %v4447_v3 }
0x2923   :  { %4178 = vmatpush3.bf16.msra.mxu1 %v5000_v43 }
0x2924   :  { %4185 = vmatprep.subr.bf16.mxu1 %v4447_v3 }
0x29f1   :  { %v2659_v32 = vpop.f32.mrb[26].mxu1 }
0x29f2   :  { %v2660_v34 = vadd.f32 %v4910_v1, %v2659_v32  ;;  %v3865_v35 = vpop.f32.mrb[27].mxu1 }
0x29f4   :  { %4388 = vtanh.f32 %v2660_v34  ;;  %v3238_v36 = vmul.f32 -1.442695, %v2660_v34 }
0x29f6   :  { %4390 = vpow2.f32 %v3238_v36 }
0x29fe   :  { %v4389_v11 = vpop.eup %4388 }
0x29ff   :  { %2672 = vrot.lane.b32.xlu1 %v4389_v11, %s4450_s15 }
0x2a00   :  { %v4391_v38 = vpop.eup %4390 }
0x2a01   :  { %v2666_v39 = vadd.f32 1.0, %v4391_v38 }
0x2a03   :  { %4392 = vrcp.f32 %v2666_v39 }
0x2a0d   :  { %v4393_v40 = vpop.eup %4392 }
0x2a0e   :  { %v2670_v46 = vmul.f32 %v4393_v40, %v5089_v57 }
0x2a71   :  { %v2673_v42 = vpop.permute.xlu1 %2672 }
0x2a72   :  { %v2675_v44 = vmul.f32 %v4393_v40, %v2673_v42 }
0x2a74   :  { %2677 = vrot.lane.b32.xlu0 %v2675_v44, %s4451_s16 }
0x2ae6   :  { %v2678_v47 = vpop.permute.xlu0 %2677 }
0x2ae7   :  { %v5141_v48 = vadd.f32 %v2678_v47, %v2670_v46 }
0x2ae9   :  { %4394 = vtanh.f32 %v5141_v48 }
0x2af3   :  { %v4395_v50 = vpop.eup %4394 }
0x2af4   :  { %2683 = vrot.lane.b32.xlu1 %v4395_v50, %s4450_s15 }
0x2af8   :  { %2691 = vrot.lane.b32.xlu1 %v2508_v24, %s4450_s15 }
0x2b66   :  { %v2684_v51 = vpop.permute.xlu1 %2683 }
0x2b67   :  { %v2686_v52 = vmul.f32 %v4393_v40, %v2684_v51 }
0x2b69   :  { %2688 = vrot.lane.b32.xlu0 %v2686_v52, %s4451_s16 }
0x2b6a   :  { %v2692_v53 = vpop.permute.xlu1 %2691 }
0x2bdb   :  { %v2689_v54 = vpop.permute.xlu0 %2688 }
0x2bdc   :  { %v2694_v55 = vsel %vm174_vm4, %v2689_v54, %v2692_v53 }
0x2bdd   :  { %3883 = vmatmul.mubr.msk.f32.vlgmr.msra.gmra.mrb[24].mxu0 %vm176_vm5, %v2694_v55 }
0x2bde   :  { %4181 = vmatpush3.bf16.msra.mxu0 %v4506_v4  ;;  %3906 = vmatprep.mubr.msk.f32.mxu0 %vm4448_vm0, %v4449_v6 }
0x2bdf   :  { %4182 = vmatprep.subr.bf16.mxu0 %v4447_v3 }
0x2be2   :  { %4184 = vmatpush3.bf16.msra.mxu0 %v4517_v7 }
0x2be3   :  { %3904 = vmatprep.subr.mxu0 %v4449_v6 }
0x2be6   :  { %3905 = vmatpush3.msk.msra.mxu0 %vm72_vm2, %v4897_v60 }
0x2be7   :  { %4197 = vmatprep.subr.bf16.mxu0 %v4447_v3 }
0x2cb0   :  { %v2764_v45 = vpop.f32.mrb[24].mxu0 }
0x2cb1   :  { %v2765_v56 = vadd.f32 %v4977_v23, %v2764_v45  ;;  %v3884_v57 = vpop.f32.mrb[25].mxu0 }
0x2cb3   :  { %4396 = vtanh.f32 %v2765_v56  ;;  %v3240_v58 = vmul.f32 -1.442695, %v2765_v56 }
0x2cb5   :  { %4398 = vpow2.f32 %v3240_v58 }
0x2cbd   :  { %v4397_v4 = vpop.eup %4396 }
0x2cbe   :  { %2777 = vrot.lane.b32.xlu0 %v4397_v4, %s4450_s15 }
0x2cbf   :  { %v4399_v59 = vpop.eup %4398 }
0x2cc0   :  { %v2771_v61 = vadd.f32 1.0, %v4399_v59 }
0x2cc2   :  { %4400 = vrcp.f32 %v2771_v61 }
0x2ccc   :  { %v4401_v7 = vpop.eup %4400 }
0x2ccd   :  { %v2775_v60 = vmul.f32 %v4401_v7, %v5111_v20 }
0x2d30   :  { %v2778_v62 = vpop.permute.xlu0 %2777 }
0x2d31   :  { %v2780_v63 = vmul.f32 %v4401_v7, %v2778_v62 }
0x2d33   :  { %2782 = vrot.lane.b32.xlu1 %v2780_v63, %s4451_s16 }
0x2da5   :  { %v2783_v0 = vpop.permute.xlu1 %2782 }
0x2da6   :  { %v5162_v2 = vadd.f32 %v2783_v0, %v2775_v60 }
0x2da8   :  { %4402 = vtanh.f32 %v5162_v2 }
0x2db2   :  { %v4403_v5 = vpop.eup %4402 }
0x2db3   :  { %2788 = vrot.lane.b32.xlu0 %v4403_v5, %s4450_s15 }
0x2db7   :  { %2869 = vrot.lane.b32.xlu0 %v2686_v52, %s4452_s10  ;;  %s3157_s10 = sshll.u32 %s4453_s6, 4  ;;  %s3158_s10 = int_to_ptr.vmem [resolvable:$true] %s3157_s10 }
0x2db8   :  { %s4423_s18 = scalar_lea.vmem %s3158_s10, 640  ;;  %p4428_p1 = scmp.lt.s32.totalorder %s3158_s10, %s3158_s10 }
0x2db9   :  { %p4424_p0 = scmp.ne.s32.totalorder %s3158_s10, %s4423_s18  ;;  %p4429_p2 = scmp.lt.s32.totalorder %s4423_s18, %s4423_s18 }
0x2dbb   :  { %p4430_p3 = por %p4429_p2, %p4428_p1 }
0x2dbd   :  { %p4431_p4 = pnand %p4430_p3, %p4424_p0 }
0x2e25   :  { %v2789_v8 = vpop.permute.xlu0 %2788 }
0x2e26   :  { %v2791_v10 = vmul.f32 %v4401_v7, %v2789_v8 }
0x2e28   :  { %2793 = vrot.lane.b32.xlu1 %v2791_v10, %s4451_s16 }
0x2e9a   :  { %v2794_v13 = vpop.permute.xlu1 %2793 }
0x2e9b   :  { %3894 = vmatmul.mubr.msk.f32.vlgmr.msra.gmra.mrb[28].mxu1 %vm174_vm4, %v2794_v13 }
0x2e9c   :  { %4187 = vmatpush3.bf16.msra.mxu1 %v4564_v28  ;;  %3925 = vmatprep.mubr.msk.f32.mxu1 %vm4448_vm0, %v4449_v6  ;;  %v2870_v28 = vpop.permute.xlu0 %2869 }
0x2e9d   :  { %4188 = vmatprep.subr.bf16.mxu1 %v4447_v3 }
0x2ea0   :  { %4190 = vmatpush3.bf16.msra.mxu1 %v4570_v30 }
0x2ea1   :  { %4191 = vmatprep.subr.bf16.mxu1 %v4447_v3 }
0x2ea4   :  { %4193 = vmatpush3.bf16.msra.mxu1 %v4580_v33 }
0x2ea5   :  { %4194 = vmatprep.subr.bf16.mxu1 %v4447_v3 }
0x2ea8   :  { %4196 = vmatpush3.bf16.msra.mxu1 %v4591_v37 }
0x2f6e   :  { %v2863_v14 = vpop.f32.mrb[28].mxu1 }
0x2f6f   :  { %v2864_v15 = vadd.f32 %v5021_v49, %v2863_v14  ;;  %v3895_v16 = vpop.f32.mrb[29].mxu1 }
0x2f71   :  { %2868 = vst.msk [vmem:[#allocation2 + $0x18] sm:$0xff] %vm66_vm1, %v2864_v15  ;;  %v2872_v17 = vsel %vm66_vm1, %v2864_v15, %v2870_v28 }
0x2f72   :  { %3907 = vmatmul.mubr.msk.f32.vlgmr.msra.gmra.mrb[26].mxu0 %vm68_vm3, %v2872_v17 }
0x2f73   :  { %4199 = vmatpush3.bf16.msra.mxu0 %v4994_v41  ;;  %3936 = vmatprep.mubr.msk.f32.mxu0 %vm4448_vm0, %v4449_v6 }
0x2f74   :  { %4200 = vmatprep.subr.bf16.mxu0 %v4447_v3 }
0x2f77   :  { %4202 = vmatpush3.bf16.msra.mxu0 %v5000_v43 }
0x3045   :  { %v2942_v30 = vpop.f32.mrb[26].mxu0 }
0x3046   :  { %v2943_v33 = vadd.f32 %v4910_v1, %v2942_v30  ;;  %v3908_v37 = vpop.f32.mrb[27].mxu0 }
0x3048   :  { %4404 = vtanh.f32 %v2943_v33  ;;  %v3244_v18 = vmul.f32 -1.442695, %v2943_v33 }
0x304a   :  { %4406 = vpow2.f32 %v3244_v18 }
0x3052   :  { %v4405_v12 = vpop.eup %4404 }
0x3053   :  { %2955 = vrot.lane.b32.xlu1 %v4405_v12, %s4450_s15 }
0x3054   :  { %v4407_v19 = vpop.eup %4406 }
0x3055   :  { %v2949_v20 = vadd.f32 1.0, %v4407_v19 }
0x3057   :  { %4408 = vrcp.f32 %v2949_v20 }
0x3061   :  { %v4409_v41 = vpop.eup %4408 }
0x3062   :  { %v2953_v3 = vmul.f32 %v4409_v41, %v5141_v48 }
0x30c5   :  { %v2956_v21 = vpop.permute.xlu1 %2955 }
0x30c6   :  { %v2958_v6 = vmul.f32 %v4409_v41, %v2956_v21 }
0x30c8   :  { %2960 = vrot.lane.b32.xlu0 %v2958_v6, %s4451_s16 }
0x313a   :  { %v2961_v43 = vpop.permute.xlu0 %2960 }
0x313b   :  { %v2963_v22 = vadd.f32 %v2961_v43, %v2953_v3 }
0x313d   :  { %4410 = vtanh.f32 %v2963_v22 }
0x3147   :  { %v4411_v1 = vpop.eup %4410 }
0x3148   :  { %2966 = vrot.lane.b32.xlu1 %v4411_v1, %s4450_s15 }
0x314c   :  { %2974 = vrot.lane.b32.xlu1 %v2791_v10, %s4450_s15 }
0x31ba   :  { %v2967_v24 = vpop.permute.xlu1 %2966 }
0x31bb   :  { %v2969_v9 = vmul.f32 %v4409_v41, %v2967_v24 }
0x31bd   :  { %2971 = vrot.lane.b32.xlu0 %v2969_v9, %s4451_s16 }
0x31be   :  { %v2975_v25 = vpop.permute.xlu1 %2974 }
0x322f   :  { %v2972_v26 = vpop.permute.xlu0 %2971 }
0x3230   :  { %v2977_v27 = vsel %vm174_vm4, %v2972_v26, %v2975_v25 }
0x3231   :  { %3926 = vmatmul.mubr.msk.f32.vlgmr.msra.gmra.mrb[30].mxu1 %vm176_vm5, %v2977_v27 }
0x3304   :  { %v3047_v29 = vpop.f32.mrb[30].mxu1 }
0x3305   :  { %v3048_v31 = vadd.f32 %v4977_v23, %v3047_v29  ;;  %v3927_v32 = vpop.f32.mrb[31].mxu1 }
0x3307   :  { %4412 = vtanh.f32 %v3048_v31  ;;  %v3246_v35 = vmul.f32 -1.442695, %v3048_v31 }
0x3309   :  { %4414 = vpow2.f32 %v3246_v35 }
0x3311   :  { %v4413_v34 = vpop.eup %4412 }
0x3312   :  { %3060 = vrot.lane.b32.xlu0 %v4413_v34, %s4450_s15 }
0x3313   :  { %v4415_v11 = vpop.eup %4414 }
0x3314   :  { %v3054_v36 = vadd.f32 1.0, %v4415_v11 }
0x3316   :  { %4416 = vrcp.f32 %v3054_v36 }
0x3320   :  { %v4417_v38 = vpop.eup %4416 }
0x3321   :  { %v3058_v42 = vmul.f32 %v4417_v38, %v5162_v2 }
0x3384   :  { %v3061_v39 = vpop.permute.xlu0 %3060 }
0x3385   :  { %v3063_v40 = vmul.f32 %v4417_v38, %v3061_v39 }
0x3387   :  { %3065 = vrot.lane.b32.xlu1 %v3063_v40, %s4451_s16 }
0x33f9   :  { %v3066_v44 = vpop.permute.xlu1 %3065 }
0x33fa   :  { %v3068_v46 = vadd.f32 %v3066_v44, %v3058_v42 }
0x33fc   :  { %4418 = vtanh.f32 %v3068_v46 }
0x3406   :  { %v4419_v23 = vpop.eup %4418 }
0x3407   :  { %3071 = vrot.lane.b32.xlu0 %v4419_v23, %s4450_s15 }
0x3479   :  { %v3072_v47 = vpop.permute.xlu0 %3071 }
0x347a   :  { %v3074_v48 = vmul.f32 %v4417_v38, %v3072_v47 }
0x347c   :  { %3076 = vrot.lane.b32.xlu1 %v3074_v48, %s4451_s16 }
0x34ee   :  { %v3077_v50 = vpop.permute.xlu1 %3076 }
0x34ef   :  { %3937 = vmatmul.mubr.msk.f32.vlgmr.msra.gmra.mrb[28].mxu0 %vm174_vm4, %v3077_v50 }
0x35c2   :  { %v3146_v51 = vpop.f32.mrb[28].mxu0 }
0x35c3   :  { %v3147_v52 = vadd.f32 %v5021_v49, %v3146_v51  ;;  %v3938_v53 = vpop.f32.mrb[29].mxu0 }
0x35c5   :  { %3151 = vst.msk [vmem:[#allocation2 + $0x20] sm:$0xff] %vm66_vm1, %v3147_v52 }
0x35c6   :  { %4434 = shalt.err (!%p4431_p4)
}
0x35c7   :  { %s4435_s19 = scalar_lea.hbm %s5224_s7, 640 }
0x35c8   :  { %p4436_p5 = scmp.ne.s32.totalorder %s5224_s7, %s4435_s19  ;;  %p4439_p6 = scmp.lt.u32.totalorder %s4435_s19, %s5224_s7 }
0x35ca   :  { %p4441_p7 = pnand %p4439_p6, %p4436_p5 }
0x35cc   :  { %4444 = shalt.err (!%p4441_p7)
}
0x35cd   :  { %s4454_s24 = smov 128   ;;  %s4455_s25 = smov 8  }
0x35ce   :  { %3163 = dma.vmem_to_hbm [thread:$0]  %s3158_s10, 640, %s5224_s7, [#allocation3], %s4454_s24, %s4454_s24, %s4455_s25  }
0x35cf   :  { %4445 = dma.done.wait [#allocation3], 640  }
0x35d0   :  { %4446 = vsyncadd [#allocation3], 4294966656 }
0x35d1   :  { %3167 = vsyncpa [#allocation3], 1 }

</bundles_post_ra>
